<compile_context>
chip_gen: v6e
topology: v6e:2x2x1
jax: 0.10.0
libtpu: 0.0.40
codegen_flags: <defaults>
</compile_context>

<pallas_src>
import jax
import jax.numpy as jnp
import numpy as np
from jax.experimental import pallas as pl
from jax.experimental.pallas import tpu as pltpu

# ----- problem sizes (small, consistent with the forward pass) ---------------
B, L, D = 2, 8, 128          # batch, seq-len (must be >= 4 for scores[:, 3, :]), hidden
ES, ET = 4, 4                # num_shared_experts, num_specific_experts
OUT_L = 100                  # hard-coded expand length in the PyTorch forward
LK = 4                       # only L rows 0..3 influence the output
G = ES + 3 * ET              # total gate ("dnn") output columns (= 16)
GPAD = 128                   # gate columns zero-padded to one full 128-lane tile
BB = B                       # batch elements per grid step (BB*LK rows = 8 = 1 sublane tile)
ROWS = BB * LK               # rows processed per grid step


# ----------------------------- Pallas kernel ---------------------------------
def fusion_kernel(
    xcat_ref,                    # [ROWS, 3D] f32   (id | img | txt, lane-concatenated)
    wshg_ref, bshg_ref,          # shared experts + 4 gate heads  [3D, ES*D+GPAD], [1, ES*D+GPAD]
    wt1_ref, bt1_ref,            # task-1 experts  [D, ET*D], [1, ET*D]
    wt2_ref, bt2_ref,
    wt3_ref, bt3_ref,
    wa_ref, ba_ref,              # attention       [4D, D],   [1, D]
    out_ref,                     # [BB, D] f32
):
    f32, bf16 = jnp.float32, jnp.bfloat16

    xcat = xcat_ref[...]                                 # [ROWS, 3D] f32
    xcat_b = xcat.astype(bf16)
    idf = xcat[:, 0 * D:1 * D]                           # static lane-aligned f32 views
    imgf = xcat[:, 1 * D:2 * D]
    txtf = xcat[:, 2 * D:3 * D]

    # ---- shared experts + ALL 4 gate heads in ONE matmul -----------------------
    eo_all = (jnp.dot(xcat_b, wshg_ref[...], preferred_element_type=f32)
              + bshg_ref[...])                           # [ROWS, ES*D + GPAD] f32
    sel_all = eo_all[:, ES * D:ES * D + G]               # [ROWS, 16]  (lane-aligned start)

    gate_share = jnp.zeros((ROWS, D), f32)
    for e in range(ES):                                  # einsum 'abcd,bca->bcd'
        gate_share = gate_share + eo_all[:, e * D:(e + 1) * D] * sel_all[:, e:e + 1]

    # ---- task towers: one fused matmul each, gated by their sel columns --------
    def tower(x_in_f32, w_ref, b_ref, sel):
        eo = (jnp.dot(x_in_f32.astype(bf16), w_ref[...],
                      preferred_element_type=f32) + b_ref[...])   # [ROWS, ET*D]
        acc = jnp.zeros((ROWS, D), f32)
        for e in range(ET):
            acc = acc + eo[:, e * D:(e + 1) * D] * sel[:, e:e + 1]
        return acc

    gate1 = tower(idf + gate_share, wt1_ref, bt1_ref, sel_all[:, ES:ES + ET])
    gate2 = tower(imgf + gate_share, wt2_ref, bt2_ref, sel_all[:, ES + ET:ES + 2 * ET])
    gate3 = tower(txtf + gate_share, wt3_ref, bt3_ref, sel_all[:, ES + 2 * ET:ES + 3 * ET])

    # ---- attention over cat([g1, g2, g3, g_share], -1): 512 lanes, one matmul --
    comb = jnp.concatenate([gate1, gate2, gate3, gate_share], axis=-1).astype(bf16)
    logits = (jnp.dot(comb, wa_ref[...], preferred_element_type=f32) + ba_ref[...])
    logits = logits - jnp.max(logits, axis=-1, keepdims=True)
    p = jnp.exp(logits)
    scores = p * pl.reciprocal(jnp.sum(p, axis=-1, keepdims=True), approx=True)

    # ---- positional slicing + weighted sum (torch [:, k, :] rows) --------------
    # Static 2-D row slices only; row index of (batch b, seq l) is b*LK + l.
    rows_out = []
    for b in range(BB):
        r = b * LK
        rows_out.append(
            gate1[r:r + 1, :] * scores[r:r + 1, :]
            + gate2[r:r + 1, :] * scores[r + 1:r + 2, :]
            + gate3[r:r + 1, :] * scores[r + 2:r + 3, :]
            + gate_share[r:r + 1, :] * scores[r + 3:r + 4, :])
    out_ref[...] = jnp.concatenate(rows_out, axis=0)     # [BB, D]


# ------------------------------ wrapper ---------------------------------------
def _resident_spec(shape):
    # Weights: constant block index -> DMA'd once, stays VMEM-resident across grid steps.
    return pl.BlockSpec(shape, lambda i: (0, 0))


def multi_scale_fusion(id_feat, img_feat, txt_feat, packed_params):
    Bq, Lq, Dq = id_feat.shape
    assert Dq == D and Bq == B
    assert Lq >= LK, f"forward reads scores[:, 0..3, :]; need L >= {LK}, got {Lq}"

    # Hoisted concat + dead-row drop: single [B*LK, 3D] input (1 DMA instead of 3).
    xcat = jnp.concatenate(
        [id_feat[:, :LK, :], img_feat[:, :LK, :], txt_feat[:, :LK, :]],
        axis=-1).reshape(Bq * LK, 3 * D)

    weight_specs = [_resident_spec(p.shape) for p in packed_params]
    task = pl.pallas_call(
        fusion_kernel,
        out_shape=jax.ShapeDtypeStruct((Bq, D), jnp.float32),
        grid=(Bq // BB,),
        in_specs=[pl.BlockSpec((ROWS, 3 * D), lambda i: (i, 0))] + weight_specs,
        out_specs=pl.BlockSpec((BB, D), lambda i: (i, 0)),
        compiler_params=pltpu.CompilerParams(
            dimension_semantics=("parallel",)),
    )(xcat, *packed_params)

    # unsqueeze(1).expand(-1, 100, -1) done outside the kernel (free in XLA).
    return jnp.broadcast_to(task[:, None, :], (Bq, OUT_L, D))


# --------------------------- parameter init (torch-like layout) ----------------
def init_params(key):
    ks = jax.random.split(key, 18)
    scale = 0.05

    def nrm(k, shape):
        return (scale * jax.random.normal(k, shape)).astype(jnp.float32)

    W_sh = nrm(ks[0], (ES, 3 * D, D)); b_sh = nrm(ks[1], (ES, D))
    Wg_sh = nrm(ks[2], (3 * D, ES));   bg_sh = nrm(ks[3], (ES,))
    W_t1 = nrm(ks[4], (ET, D, D));     b_t1 = nrm(ks[5], (ET, D))
    Wg1 = nrm(ks[6], (D, ET));         bg1 = nrm(ks[7], (ET,))
    W_t2 = nrm(ks[8], (ET, D, D));     b_t2 = nrm(ks[9], (ET, D))
    Wg2 = nrm(ks[10], (D, ET));        bg2 = nrm(ks[11], (ET,))
    W_t3 = nrm(ks[12], (ET, D, D));    b_t3 = nrm(ks[13], (ET, D))
    Wg3 = nrm(ks[14], (D, ET));        bg3 = nrm(ks[15], (ET,))
    Wa = nrm(ks[16], (4 * D, D));      ba = nrm(ks[17], (D,))
    return (W_sh, b_sh, Wg_sh, bg_sh, W_t1, b_t1, Wg1, bg1,
            W_t2, b_t2, Wg2, bg2, W_t3, b_t3, Wg3, bg3, Wa, ba)


# -------------------- host-side packing of weights (once) ----------------------
def pack_params(p):
    (W_sh, b_sh, Wg_sh, bg_sh, W_t1, b_t1, Wg1, bg1,
     W_t2, b_t2, Wg2, bg2, W_t3, b_t3, Wg3, bg3, Wa, ba) = p
    bf16, f32 = jnp.bfloat16, jnp.float32

    def pack_experts(W, b):          # W [E, Din, D], b [E, D] -> [Din, E*D], [1, E*D]
        din = W.shape[1]
        Wp = jnp.transpose(W, (1, 0, 2)).reshape(din, -1)
        return Wp, b.reshape(1, -1).astype(f32)

    wsh_p, bsh_p = pack_experts(W_sh, b_sh)      # [3D, ES*D] f32, [1, ES*D] f32
    wt1_p, bt1_p = pack_experts(W_t1, b_t1)      # [D, ET*D]
    wt2_p, bt2_p = pack_experts(W_t2, b_t2)
    wt3_p, bt3_p = pack_experts(W_t3, b_t3)

    # All four gate ("dnn") heads as 16 extra columns (zero-padded to a 128-lane tile)
    # appended to the shared-expert weight: ONE matmul produces experts + all gates.
    # Zero rows (where a head consumes only one stream) stay exact in f32 before the cast.
    wg = jnp.zeros((3 * D, GPAD), f32)
    wg = wg.at[:, 0:ES].set(Wg_sh)
    wg = wg.at[0 * D:1 * D, ES + 0 * ET:ES + 1 * ET].set(Wg1)
    wg = wg.at[1 * D:2 * D, ES + 1 * ET:ES + 2 * ET].set(Wg2)
    wg = wg.at[2 * D:3 * D, ES + 2 * ET:ES + 3 * ET].set(Wg3)
    wshg = jnp.concatenate([wsh_p, wg], axis=1).astype(bf16)         # [3D, ES*D + GPAD]
    bg = jnp.concatenate([bg_sh, bg1, bg2, bg3,
                          jnp.zeros((GPAD - G,), f32)]).reshape(1, GPAD)
    bshg = jnp.concatenate([bsh_p, bg], axis=1).astype(f32)          # [1, ES*D + GPAD]

    return (wshg, bshg,
            wt1_p.astype(bf16), bt1_p,
            wt2_p.astype(bf16), bt2_p,
            wt3_p.astype(bf16), bt3_p,
            Wa.astype(bf16), ba.reshape(1, D).astype(f32))


# ------------------------ pure-JAX reference (torch semantics) -----------------
# Mirrors the kernel's matmul precision (bf16 operands, f32 accumulation) so the
# comparison isolates structural correctness; all gating/softmax math is f32.
def reference(id_feat, img_feat, txt_feat, p):
    (W_sh, b_sh, Wg_sh, bg_sh, W_t1, b_t1, Wg1, bg1,
     W_t2, b_t2, Wg2, bg2, W_t3, b_t3, Wg3, bg3, Wa, ba) = p

    def lin(x, w, b):
        return jnp.dot(x.astype(jnp.bfloat16), w.astype(jnp.bfloat16),
                       preferred_element_type=jnp.float32) + b

    x = jnp.concatenate([id_feat, img_feat, txt_feat], -1)            # [B, L, 3D]
    eo_sh = jnp.stack([lin(x, W_sh[e], b_sh[e]) for e in range(ES)])  # [ES, B, L, D]
    sel_s = lin(x, Wg_sh, bg_sh)                                      # [B, L, ES]
    gate_share = jnp.sum(                                             # 'abcd,bca->bcd'
        eo_sh * jnp.transpose(sel_s, (2, 0, 1))[..., None], axis=0)

    def tower(expert_in, gate_in, W, b, Wg, bg):
        eo = jnp.stack([lin(expert_in, W[e], b[e]) for e in range(ET)])
        sel = lin(gate_in, Wg, bg)
        return jnp.sum(eo * jnp.transpose(sel, (2, 0, 1))[..., None], axis=0)

    g1 = tower(id_feat + gate_share, id_feat, W_t1, b_t1, Wg1, bg1)
    g2 = tower(img_feat + gate_share, img_feat, W_t2, b_t2, Wg2, bg2)
    g3 = tower(txt_feat + gate_share, txt_feat, W_t3, b_t3, Wg3, bg3)
    combined = jnp.concatenate([g1, g2, g3, gate_share], -1)          # [B, L, 4D]
    scores = jax.nn.softmax(lin(combined, Wa, ba), axis=-1)
    task = (g1[:, 0, :] * scores[:, 0, :] + g2[:, 0, :] * scores[:, 1, :]
            + g3[:, 0, :] * scores[:, 2, :] + gate_share[:, 0, :] * scores[:, 3, :])
    return jnp.broadcast_to(task[:, None, :], (B, OUT_L, D))


if __name__ == "__main__":
    key = jax.random.PRNGKey(0)
    k_id, k_img, k_txt, k_par = jax.random.split(key, 4)
    id_feat = jax.random.normal(k_id, (B, L, D), jnp.float32)
    img_feat = jax.random.normal(k_img, (B, L, D), jnp.float32)
    txt_feat = jax.random.normal(k_txt, (B, L, D), jnp.float32)
    params = init_params(k_par)
    packed = pack_params(params)

    out = multi_scale_fusion(id_feat, img_feat, txt_feat, packed)
    out = jax.block_until_ready(out)
    assert out.shape == (B, OUT_L, D)

    ref = jax.block_until_ready(reference(id_feat, img_feat, txt_feat, params))
    np.testing.assert_allclose(np.asarray(out), np.asarray(ref), rtol=2e-2, atol=2e-2)

    print("KERNEL_OK")
</pallas_src>

<mosaic_0001>
module attributes {stable_mosaic.version = 11 : i64} {
  func.func @fusion_kernel(%arg0: i32, %arg1: memref<8x384xf32, #tpu.memory_space<vmem>>, %arg2: memref<384x640xbf16, #tpu.memory_space<vmem>>, %arg3: memref<1x640xf32, #tpu.memory_space<vmem>>, %arg4: memref<128x512xbf16, #tpu.memory_space<vmem>>, %arg5: memref<1x512xf32, #tpu.memory_space<vmem>>, %arg6: memref<128x512xbf16, #tpu.memory_space<vmem>>, %arg7: memref<1x512xf32, #tpu.memory_space<vmem>>, %arg8: memref<128x512xbf16, #tpu.memory_space<vmem>>, %arg9: memref<1x512xf32, #tpu.memory_space<vmem>>, %arg10: memref<512x128xbf16, #tpu.memory_space<vmem>>, %arg11: memref<1x128xf32, #tpu.memory_space<vmem>>, %arg12: memref<2x128xf32, #tpu.memory_space<vmem>>) attributes {dimension_semantics = [#tpu.dimension_semantics<parallel>], iteration_bounds = array<i64: 1>, scalar_prefetch = 0 : i64, scratch_operands = 0 : i64, tpu.core_type = #tpu.core_type<tc>, window_params = [{transform_indices = @transform_0, window_bounds = array<i64: 8, 384>}, {pipeline_mode = #tpu.pipeline_mode<synchronous>, transform_indices = @transform_1, window_bounds = array<i64: 384, 640>}, {pipeline_mode = #tpu.pipeline_mode<synchronous>, transform_indices = @transform_2, window_bounds = array<i64: 1, 640>}, {pipeline_mode = #tpu.pipeline_mode<synchronous>, transform_indices = @transform_3, window_bounds = array<i64: 128, 512>}, {pipeline_mode = #tpu.pipeline_mode<synchronous>, transform_indices = @transform_4, window_bounds = array<i64: 1, 512>}, {pipeline_mode = #tpu.pipeline_mode<synchronous>, transform_indices = @transform_5, window_bounds = array<i64: 128, 512>}, {pipeline_mode = #tpu.pipeline_mode<synchronous>, transform_indices = @transform_6, window_bounds = array<i64: 1, 512>}, {pipeline_mode = #tpu.pipeline_mode<synchronous>, transform_indices = @transform_7, window_bounds = array<i64: 128, 512>}, {pipeline_mode = #tpu.pipeline_mode<synchronous>, transform_indices = @transform_8, window_bounds = array<i64: 1, 512>}, {pipeline_mode = #tpu.pipeline_mode<synchronous>, transform_indices = @transform_9, window_bounds = array<i64: 512, 128>}, {pipeline_mode = #tpu.pipeline_mode<synchronous>, transform_indices = @transform_10, window_bounds = array<i64: 1, 128>}, {transform_indices = @transform_11, window_bounds = array<i64: 2, 128>}]} {
    %c0 = arith.constant 0 : index
    %c0_0 = arith.constant 0 : index
    %0 = vector.load %arg1[%c0, %c0_0] : memref<8x384xf32, #tpu.memory_space<vmem>>, vector<8x384xf32>
    %1 = arith.truncf %0 : vector<8x384xf32> to vector<8x384xbf16>
    %2 = vector.extract_strided_slice %0 {offsets = [0, 0], sizes = [8, 128], strides = [1, 1]} : vector<8x384xf32> to vector<8x128xf32>
    %3 = vector.extract_strided_slice %0 {offsets = [0, 128], sizes = [8, 128], strides = [1, 1]} : vector<8x384xf32> to vector<8x128xf32>
    %4 = vector.extract_strided_slice %0 {offsets = [0, 256], sizes = [8, 128], strides = [1, 1]} : vector<8x384xf32> to vector<8x128xf32>
    %c0_1 = arith.constant 0 : index
    %c0_2 = arith.constant 0 : index
    %5 = vector.load %arg2[%c0_1, %c0_2] : memref<384x640xbf16, #tpu.memory_space<vmem>>, vector<384x640xbf16>
    %cst = arith.constant dense<0.000000e+00> : vector<8x640xf32>
    %6 = tpu.matmul %1, %5, %cst {dimension_numbers = #tpu.dot_dimension_numbers<[1], [0], [0], [1], [0, 0, 1, 1], [], []>} : vector<8x384xbf16>, vector<384x640xbf16>, vector<8x640xf32> -> vector<8x640xf32>
    %c0_3 = arith.constant 0 : index
    %c0_4 = arith.constant 0 : index
    %7 = vector.load %arg3[%c0_3, %c0_4] : memref<1x640xf32, #tpu.memory_space<vmem>>, vector<1x640xf32>
    %8 = vector.broadcast %7 : vector<1x640xf32> to vector<8x640xf32>
    %9 = arith.addf %6, %8 : vector<8x640xf32>
    %10 = vector.extract_strided_slice %9 {offsets = [0, 512], sizes = [8, 16], strides = [1, 1]} : vector<8x640xf32> to vector<8x16xf32>
    %cst_5 = arith.constant 0.000000e+00 : f32
    %11 = vector.broadcast %cst_5 : f32 to vector<8x128xf32>
    %12 = vector.extract_strided_slice %9 {offsets = [0, 0], sizes = [8, 128], strides = [1, 1]} : vector<8x640xf32> to vector<8x128xf32>
    %13 = vector.extract_strided_slice %10 {offsets = [0, 0], sizes = [8, 1], strides = [1, 1]} : vector<8x16xf32> to vector<8x1xf32>
    %14 = vector.broadcast %13 : vector<8x1xf32> to vector<8x128xf32>
    %15 = arith.mulf %12, %14 : vector<8x128xf32>
    %16 = arith.addf %11, %15 : vector<8x128xf32>
    %17 = vector.extract_strided_slice %9 {offsets = [0, 128], sizes = [8, 128], strides = [1, 1]} : vector<8x640xf32> to vector<8x128xf32>
    %18 = vector.extract_strided_slice %10 {offsets = [0, 1], sizes = [8, 1], strides = [1, 1]} : vector<8x16xf32> to vector<8x1xf32>
    %19 = vector.broadcast %18 : vector<8x1xf32> to vector<8x128xf32>
    %20 = arith.mulf %17, %19 : vector<8x128xf32>
    %21 = arith.addf %16, %20 : vector<8x128xf32>
    %22 = vector.extract_strided_slice %9 {offsets = [0, 256], sizes = [8, 128], strides = [1, 1]} : vector<8x640xf32> to vector<8x128xf32>
    %23 = vector.extract_strided_slice %10 {offsets = [0, 2], sizes = [8, 1], strides = [1, 1]} : vector<8x16xf32> to vector<8x1xf32>
    %24 = vector.broadcast %23 : vector<8x1xf32> to vector<8x128xf32>
    %25 = arith.mulf %22, %24 : vector<8x128xf32>
    %26 = arith.addf %21, %25 : vector<8x128xf32>
    %27 = vector.extract_strided_slice %9 {offsets = [0, 384], sizes = [8, 128], strides = [1, 1]} : vector<8x640xf32> to vector<8x128xf32>
    %28 = vector.extract_strided_slice %10 {offsets = [0, 3], sizes = [8, 1], strides = [1, 1]} : vector<8x16xf32> to vector<8x1xf32>
    %29 = vector.broadcast %28 : vector<8x1xf32> to vector<8x128xf32>
    %30 = arith.mulf %27, %29 : vector<8x128xf32>
    %31 = arith.addf %26, %30 : vector<8x128xf32>
    %32 = arith.addf %2, %31 : vector<8x128xf32>
    %33 = vector.extract_strided_slice %10 {offsets = [0, 4], sizes = [8, 4], strides = [1, 1]} : vector<8x16xf32> to vector<8x4xf32>
    %34 = arith.truncf %32 : vector<8x128xf32> to vector<8x128xbf16>
    %c0_6 = arith.constant 0 : index
    %c0_7 = arith.constant 0 : index
    %35 = vector.load %arg4[%c0_6, %c0_7] : memref<128x512xbf16, #tpu.memory_space<vmem>>, vector<128x512xbf16>
    %cst_8 = arith.constant dense<0.000000e+00> : vector<8x512xf32>
    %36 = tpu.matmul %34, %35, %cst_8 {dimension_numbers = #tpu.dot_dimension_numbers<[1], [0], [0], [1], [0, 0, 1, 1], [], []>} : vector<8x128xbf16>, vector<128x512xbf16>, vector<8x512xf32> -> vector<8x512xf32>
    %c0_9 = arith.constant 0 : index
    %c0_10 = arith.constant 0 : index
    %37 = vector.load %arg5[%c0_9, %c0_10] : memref<1x512xf32, #tpu.memory_space<vmem>>, vector<1x512xf32>
    %38 = vector.broadcast %37 : vector<1x512xf32> to vector<8x512xf32>
    %39 = arith.addf %36, %38 : vector<8x512xf32>
    %cst_11 = arith.constant 0.000000e+00 : f32
    %40 = vector.broadcast %cst_11 : f32 to vector<8x128xf32>
    %41 = vector.extract_strided_slice %39 {offsets = [0, 0], sizes = [8, 128], strides = [1, 1]} : vector<8x512xf32> to vector<8x128xf32>
    %42 = vector.extract_strided_slice %33 {offsets = [0, 0], sizes = [8, 1], strides = [1, 1]} : vector<8x4xf32> to vector<8x1xf32>
    %43 = vector.broadcast %42 : vector<8x1xf32> to vector<8x128xf32>
    %44 = arith.mulf %41, %43 : vector<8x128xf32>
    %45 = arith.addf %40, %44 : vector<8x128xf32>
    %46 = vector.extract_strided_slice %39 {offsets = [0, 128], sizes = [8, 128], strides = [1, 1]} : vector<8x512xf32> to vector<8x128xf32>
    %47 = vector.extract_strided_slice %33 {offsets = [0, 1], sizes = [8, 1], strides = [1, 1]} : vector<8x4xf32> to vector<8x1xf32>
    %48 = vector.broadcast %47 : vector<8x1xf32> to vector<8x128xf32>
    %49 = arith.mulf %46, %48 : vector<8x128xf32>
    %50 = arith.addf %45, %49 : vector<8x128xf32>
    %51 = vector.extract_strided_slice %39 {offsets = [0, 256], sizes = [8, 128], strides = [1, 1]} : vector<8x512xf32> to vector<8x128xf32>
    %52 = vector.extract_strided_slice %33 {offsets = [0, 2], sizes = [8, 1], strides = [1, 1]} : vector<8x4xf32> to vector<8x1xf32>
    %53 = vector.broadcast %52 : vector<8x1xf32> to vector<8x128xf32>
    %54 = arith.mulf %51, %53 : vector<8x128xf32>
    %55 = arith.addf %50, %54 : vector<8x128xf32>
    %56 = vector.extract_strided_slice %39 {offsets = [0, 384], sizes = [8, 128], strides = [1, 1]} : vector<8x512xf32> to vector<8x128xf32>
    %57 = vector.extract_strided_slice %33 {offsets = [0, 3], sizes = [8, 1], strides = [1, 1]} : vector<8x4xf32> to vector<8x1xf32>
    %58 = vector.broadcast %57 : vector<8x1xf32> to vector<8x128xf32>
    %59 = arith.mulf %56, %58 : vector<8x128xf32>
    %60 = arith.addf %55, %59 : vector<8x128xf32>
    %61 = arith.addf %3, %31 : vector<8x128xf32>
    %62 = vector.extract_strided_slice %10 {offsets = [0, 8], sizes = [8, 4], strides = [1, 1]} : vector<8x16xf32> to vector<8x4xf32>
    %63 = arith.truncf %61 : vector<8x128xf32> to vector<8x128xbf16>
    %c0_12 = arith.constant 0 : index
    %c0_13 = arith.constant 0 : index
    %64 = vector.load %arg6[%c0_12, %c0_13] : memref<128x512xbf16, #tpu.memory_space<vmem>>, vector<128x512xbf16>
    %cst_14 = arith.constant dense<0.000000e+00> : vector<8x512xf32>
    %65 = tpu.matmul %63, %64, %cst_14 {dimension_numbers = #tpu.dot_dimension_numbers<[1], [0], [0], [1], [0, 0, 1, 1], [], []>} : vector<8x128xbf16>, vector<128x512xbf16>, vector<8x512xf32> -> vector<8x512xf32>
    %c0_15 = arith.constant 0 : index
    %c0_16 = arith.constant 0 : index
    %66 = vector.load %arg7[%c0_15, %c0_16] : memref<1x512xf32, #tpu.memory_space<vmem>>, vector<1x512xf32>
    %67 = vector.broadcast %66 : vector<1x512xf32> to vector<8x512xf32>
    %68 = arith.addf %65, %67 : vector<8x512xf32>
    %cst_17 = arith.constant 0.000000e+00 : f32
    %69 = vector.broadcast %cst_17 : f32 to vector<8x128xf32>
    %70 = vector.extract_strided_slice %68 {offsets = [0, 0], sizes = [8, 128], strides = [1, 1]} : vector<8x512xf32> to vector<8x128xf32>
    %71 = vector.extract_strided_slice %62 {offsets = [0, 0], sizes = [8, 1], strides = [1, 1]} : vector<8x4xf32> to vector<8x1xf32>
    %72 = vector.broadcast %71 : vector<8x1xf32> to vector<8x128xf32>
    %73 = arith.mulf %70, %72 : vector<8x128xf32>
    %74 = arith.addf %69, %73 : vector<8x128xf32>
    %75 = vector.extract_strided_slice %68 {offsets = [0, 128], sizes = [8, 128], strides = [1, 1]} : vector<8x512xf32> to vector<8x128xf32>
    %76 = vector.extract_strided_slice %62 {offsets = [0, 1], sizes = [8, 1], strides = [1, 1]} : vector<8x4xf32> to vector<8x1xf32>
    %77 = vector.broadcast %76 : vector<8x1xf32> to vector<8x128xf32>
    %78 = arith.mulf %75, %77 : vector<8x128xf32>
    %79 = arith.addf %74, %78 : vector<8x128xf32>
    %80 = vector.extract_strided_slice %68 {offsets = [0, 256], sizes = [8, 128], strides = [1, 1]} : vector<8x512xf32> to vector<8x128xf32>
    %81 = vector.extract_strided_slice %62 {offsets = [0, 2], sizes = [8, 1], strides = [1, 1]} : vector<8x4xf32> to vector<8x1xf32>
    %82 = vector.broadcast %81 : vector<8x1xf32> to vector<8x128xf32>
    %83 = arith.mulf %80, %82 : vector<8x128xf32>
    %84 = arith.addf %79, %83 : vector<8x128xf32>
    %85 = vector.extract_strided_slice %68 {offsets = [0, 384], sizes = [8, 128], strides = [1, 1]} : vector<8x512xf32> to vector<8x128xf32>
    %86 = vector.extract_strided_slice %62 {offsets = [0, 3], sizes = [8, 1], strides = [1, 1]} : vector<8x4xf32> to vector<8x1xf32>
    %87 = vector.broadcast %86 : vector<8x1xf32> to vector<8x128xf32>
    %88 = arith.mulf %85, %87 : vector<8x128xf32>
    %89 = arith.addf %84, %88 : vector<8x128xf32>
    %90 = arith.addf %4, %31 : vector<8x128xf32>
    %91 = vector.extract_strided_slice %10 {offsets = [0, 12], sizes = [8, 4], strides = [1, 1]} : vector<8x16xf32> to vector<8x4xf32>
    %92 = arith.truncf %90 : vector<8x128xf32> to vector<8x128xbf16>
    %c0_18 = arith.constant 0 : index
    %c0_19 = arith.constant 0 : index
    %93 = vector.load %arg8[%c0_18, %c0_19] : memref<128x512xbf16, #tpu.memory_space<vmem>>, vector<128x512xbf16>
    %cst_20 = arith.constant dense<0.000000e+00> : vector<8x512xf32>
    %94 = tpu.matmul %92, %93, %cst_20 {dimension_numbers = #tpu.dot_dimension_numbers<[1], [0], [0], [1], [0, 0, 1, 1], [], []>} : vector<8x128xbf16>, vector<128x512xbf16>, vector<8x512xf32> -> vector<8x512xf32>
    %c0_21 = arith.constant 0 : index
    %c0_22 = arith.constant 0 : index
    %95 = vector.load %arg9[%c0_21, %c0_22] : memref<1x512xf32, #tpu.memory_space<vmem>>, vector<1x512xf32>
    %96 = vector.broadcast %95 : vector<1x512xf32> to vector<8x512xf32>
    %97 = arith.addf %94, %96 : vector<8x512xf32>
    %cst_23 = arith.constant 0.000000e+00 : f32
    %98 = vector.broadcast %cst_23 : f32 to vector<8x128xf32>
    %99 = vector.extract_strided_slice %97 {offsets = [0, 0], sizes = [8, 128], strides = [1, 1]} : vector<8x512xf32> to vector<8x128xf32>
    %100 = vector.extract_strided_slice %91 {offsets = [0, 0], sizes = [8, 1], strides = [1, 1]} : vector<8x4xf32> to vector<8x1xf32>
    %101 = vector.broadcast %100 : vector<8x1xf32> to vector<8x128xf32>
    %102 = arith.mulf %99, %101 : vector<8x128xf32>
    %103 = arith.addf %98, %102 : vector<8x128xf32>
    %104 = vector.extract_strided_slice %97 {offsets = [0, 128], sizes = [8, 128], strides = [1, 1]} : vector<8x512xf32> to vector<8x128xf32>
    %105 = vector.extract_strided_slice %91 {offsets = [0, 1], sizes = [8, 1], strides = [1, 1]} : vector<8x4xf32> to vector<8x1xf32>
    %106 = vector.broadcast %105 : vector<8x1xf32> to vector<8x128xf32>
    %107 = arith.mulf %104, %106 : vector<8x128xf32>
    %108 = arith.addf %103, %107 : vector<8x128xf32>
    %109 = vector.extract_strided_slice %97 {offsets = [0, 256], sizes = [8, 128], strides = [1, 1]} : vector<8x512xf32> to vector<8x128xf32>
    %110 = vector.extract_strided_slice %91 {offsets = [0, 2], sizes = [8, 1], strides = [1, 1]} : vector<8x4xf32> to vector<8x1xf32>
    %111 = vector.broadcast %110 : vector<8x1xf32> to vector<8x128xf32>
    %112 = arith.mulf %109, %111 : vector<8x128xf32>
    %113 = arith.addf %108, %112 : vector<8x128xf32>
    %114 = vector.extract_strided_slice %97 {offsets = [0, 384], sizes = [8, 128], strides = [1, 1]} : vector<8x512xf32> to vector<8x128xf32>
    %115 = vector.extract_strided_slice %91 {offsets = [0, 3], sizes = [8, 1], strides = [1, 1]} : vector<8x4xf32> to vector<8x1xf32>
    %116 = vector.broadcast %115 : vector<8x1xf32> to vector<8x128xf32>
    %117 = arith.mulf %114, %116 : vector<8x128xf32>
    %118 = arith.addf %113, %117 : vector<8x128xf32>
    %119 = tpu.concatenate %60, %89, %118, %31 in 1 : vector<8x128xf32>, vector<8x128xf32>, vector<8x128xf32>, vector<8x128xf32> -> vector<8x512xf32>
    %120 = arith.truncf %119 : vector<8x512xf32> to vector<8x512xbf16>
    %c0_24 = arith.constant 0 : index
    %c0_25 = arith.constant 0 : index
    %121 = vector.load %arg10[%c0_24, %c0_25] : memref<512x128xbf16, #tpu.memory_space<vmem>>, vector<512x128xbf16>
    %cst_26 = arith.constant dense<0.000000e+00> : vector<8x128xf32>
    %122 = tpu.matmul %120, %121, %cst_26 {dimension_numbers = #tpu.dot_dimension_numbers<[1], [0], [0], [1], [0, 0, 1, 1], [], []>} : vector<8x512xbf16>, vector<512x128xbf16>, vector<8x128xf32> -> vector<8x128xf32>
    %c0_27 = arith.constant 0 : index
    %c0_28 = arith.constant 0 : index
    %123 = vector.load %arg11[%c0_27, %c0_28] : memref<1x128xf32, #tpu.memory_space<vmem>>, vector<1x128xf32>
    %124 = vector.broadcast %123 : vector<1x128xf32> to vector<8x128xf32>
    %125 = arith.addf %122, %124 : vector<8x128xf32>
    %cst_29 = arith.constant dense<0xFF800000> : vector<8xf32>
    %126 = vector.multi_reduction <maximumf>, %125, %cst_29 [1] : vector<8x128xf32> to vector<8xf32>
    %127 = vector.shape_cast %126 : vector<8xf32> to vector<8x1xf32>
    %128 = vector.broadcast %127 : vector<8x1xf32> to vector<8x128xf32>
    %129 = arith.subf %125, %128 : vector<8x128xf32>
    %130 = math.exp %129 : vector<8x128xf32>
    %cst_30 = arith.constant dense<0.000000e+00> : vector<8xf32>
    %131 = vector.multi_reduction <add>, %130, %cst_30 [1] : vector<8x128xf32> to vector<8xf32>
    %132 = vector.shape_cast %131 : vector<8xf32> to vector<8x1xf32>
    %133 = tpu.reciprocal %132 {approx = true} : vector<8x1xf32> -> vector<8x1xf32>
    %134 = vector.broadcast %133 : vector<8x1xf32> to vector<8x128xf32>
    %135 = arith.mulf %130, %134 : vector<8x128xf32>
    %136 = vector.extract_strided_slice %60 {offsets = [0, 0], sizes = [1, 128], strides = [1, 1]} : vector<8x128xf32> to vector<1x128xf32>
    %137 = vector.extract_strided_slice %135 {offsets = [0, 0], sizes = [1, 128], strides = [1, 1]} : vector<8x128xf32> to vector<1x128xf32>
    %138 = arith.mulf %136, %137 : vector<1x128xf32>
    %139 = vector.extract_strided_slice %89 {offsets = [0, 0], sizes = [1, 128], strides = [1, 1]} : vector<8x128xf32> to vector<1x128xf32>
    %140 = vector.extract_strided_slice %135 {offsets = [1, 0], sizes = [1, 128], strides = [1, 1]} : vector<8x128xf32> to vector<1x128xf32>
    %141 = arith.mulf %139, %140 : vector<1x128xf32>
    %142 = arith.addf %138, %141 : vector<1x128xf32>
    %143 = vector.extract_strided_slice %118 {offsets = [0, 0], sizes = [1, 128], strides = [1, 1]} : vector<8x128xf32> to vector<1x128xf32>
    %144 = vector.extract_strided_slice %135 {offsets = [2, 0], sizes = [1, 128], strides = [1, 1]} : vector<8x128xf32> to vector<1x128xf32>
    %145 = arith.mulf %143, %144 : vector<1x128xf32>
    %146 = arith.addf %142, %145 : vector<1x128xf32>
    %147 = vector.extract_strided_slice %31 {offsets = [0, 0], sizes = [1, 128], strides = [1, 1]} : vector<8x128xf32> to vector<1x128xf32>
    %148 = vector.extract_strided_slice %135 {offsets = [3, 0], sizes = [1, 128], strides = [1, 1]} : vector<8x128xf32> to vector<1x128xf32>
    %149 = arith.mulf %147, %148 : vector<1x128xf32>
    %150 = arith.addf %146, %149 : vector<1x128xf32>
    %151 = vector.extract_strided_slice %60 {offsets = [4, 0], sizes = [1, 128], strides = [1, 1]} : vector<8x128xf32> to vector<1x128xf32>
    %152 = vector.extract_strided_slice %135 {offsets = [4, 0], sizes = [1, 128], strides = [1, 1]} : vector<8x128xf32> to vector<1x128xf32>
    %153 = arith.mulf %151, %152 : vector<1x128xf32>
    %154 = vector.extract_strided_slice %89 {offsets = [4, 0], sizes = [1, 128], strides = [1, 1]} : vector<8x128xf32> to vector<1x128xf32>
    %155 = vector.extract_strided_slice %135 {offsets = [5, 0], sizes = [1, 128], strides = [1, 1]} : vector<8x128xf32> to vector<1x128xf32>
    %156 = arith.mulf %154, %155 : vector<1x128xf32>
    %157 = arith.addf %153, %156 : vector<1x128xf32>
    %158 = vector.extract_strided_slice %118 {offsets = [4, 0], sizes = [1, 128], strides = [1, 1]} : vector<8x128xf32> to vector<1x128xf32>
    %159 = vector.extract_strided_slice %135 {offsets = [6, 0], sizes = [1, 128], strides = [1, 1]} : vector<8x128xf32> to vector<1x128xf32>
    %160 = arith.mulf %158, %159 : vector<1x128xf32>
    %161 = arith.addf %157, %160 : vector<1x128xf32>
    %162 = vector.extract_strided_slice %31 {offsets = [4, 0], sizes = [1, 128], strides = [1, 1]} : vector<8x128xf32> to vector<1x128xf32>
    %163 = vector.extract_strided_slice %135 {offsets = [7, 0], sizes = [1, 128], strides = [1, 1]} : vector<8x128xf32> to vector<1x128xf32>
    %164 = arith.mulf %162, %163 : vector<1x128xf32>
    %165 = arith.addf %161, %164 : vector<1x128xf32>
    %166 = tpu.concatenate %150, %165 in 0 : vector<1x128xf32>, vector<1x128xf32> -> vector<2x128xf32>
    %c0_31 = arith.constant 0 : index
    %c0_32 = arith.constant 0 : index
    %167 = vector.load %arg12[%c0_31, %c0_32] : memref<2x128xf32, #tpu.memory_space<vmem>>, vector<2x128xf32>
    tpu.vector_store %arg12[%c0_31, %c0_32], %166 {strides = array<i32>} : memref<2x128xf32, #tpu.memory_space<vmem>>, vector<2x128xf32>,
    return
  }
  func.func @transform_0(%arg0: i32) -> (i32, i32) {
    %c0_i32 = arith.constant 0 : i32
    %c0_i32_0 = arith.constant 0 : i32
    return %arg0, %c0_i32 : i32, i32
  }
  func.func @transform_1(%arg0: i32) -> (i32, i32) {
    %c0_i32 = arith.constant 0 : i32
    %c0_i32_0 = arith.constant 0 : i32
    %c0_i32_1 = arith.constant 0 : i32
    return %c0_i32, %c0_i32_0 : i32, i32
  }
  func.func @transform_2(%arg0: i32) -> (i32, i32) {
    %c0_i32 = arith.constant 0 : i32
    %c0_i32_0 = arith.constant 0 : i32
    %c0_i32_1 = arith.constant 0 : i32
    return %c0_i32, %c0_i32_0 : i32, i32
  }
  func.func @transform_3(%arg0: i32) -> (i32, i32) {
    %c0_i32 = arith.constant 0 : i32
    %c0_i32_0 = arith.constant 0 : i32
    %c0_i32_1 = arith.constant 0 : i32
    return %c0_i32, %c0_i32_0 : i32, i32
  }
  func.func @transform_4(%arg0: i32) -> (i32, i32) {
    %c0_i32 = arith.constant 0 : i32
    %c0_i32_0 = arith.constant 0 : i32
    %c0_i32_1 = arith.constant 0 : i32
    return %c0_i32, %c0_i32_0 : i32, i32
  }
  func.func @transform_5(%arg0: i32) -> (i32, i32) {
    %c0_i32 = arith.constant 0 : i32
    %c0_i32_0 = arith.constant 0 : i32
    %c0_i32_1 = arith.constant 0 : i32
    return %c0_i32, %c0_i32_0 : i32, i32
  }
  func.func @transform_6(%arg0: i32) -> (i32, i32) {
    %c0_i32 = arith.constant 0 : i32
    %c0_i32_0 = arith.constant 0 : i32
    %c0_i32_1 = arith.constant 0 : i32
    return %c0_i32, %c0_i32_0 : i32, i32
  }
  func.func @transform_7(%arg0: i32) -> (i32, i32) {
    %c0_i32 = arith.constant 0 : i32
    %c0_i32_0 = arith.constant 0 : i32
    %c0_i32_1 = arith.constant 0 : i32
    return %c0_i32, %c0_i32_0 : i32, i32
  }
  func.func @transform_8(%arg0: i32) -> (i32, i32) {
    %c0_i32 = arith.constant 0 : i32
    %c0_i32_0 = arith.constant 0 : i32
    %c0_i32_1 = arith.constant 0 : i32
    return %c0_i32, %c0_i32_0 : i32, i32
  }
  func.func @transform_9(%arg0: i32) -> (i32, i32) {
    %c0_i32 = arith.constant 0 : i32
    %c0_i32_0 = arith.constant 0 : i32
    %c0_i32_1 = arith.constant 0 : i32
    return %c0_i32, %c0_i32_0 : i32, i32
  }
  func.func @transform_10(%arg0: i32) -> (i32, i32) {
    %c0_i32 = arith.constant 0 : i32
    %c0_i32_0 = arith.constant 0 : i32
    %c0_i32_1 = arith.constant 0 : i32
    return %c0_i32, %c0_i32_0 : i32, i32
  }
  func.func @transform_11(%arg0: i32) -> (i32, i32) {
    %c0_i32 = arith.constant 0 : i32
    %c0_i32_0 = arith.constant 0 : i32
    return %arg0, %c0_i32 : i32, i32
  }
}

</mosaic_0001>

<bundles_post_ra>
// kernel: tpu_custom_call.1
= control target key start
LH: loop header
LB: loop body
LE: loop exit
PB: predicated region body
PF: predicated region fallthrough
CT: control target
= control target key end

     0   :  { %16 = vsyncpa [#allocation3], 0  ;;  %s3705_s0 = inlined_call_operand.hbm [shape: f32[8,384], index: 0, kind: input, shape index: {}]   ;;  %s3706_s1 = inlined_call_operand.hbm [shape: bf16[384,640], index: 1, kind: input, shape index: {}]   ;;  %s3707_s2 = inlined_call_operand.hbm [shape: f32[1,640], index: 2, kind: input, shape index: {}]   ;;  %s3708_s3 = inlined_call_operand.hbm [shape: bf16[128,512], index: 3, kind: input, shape index: {}]   ;;  %s3709_s4 = inlined_call_operand.vmem [shape: f32[1,512], index: 4, kind: input, shape index: {}]   ;;  %s3710_s5 = inlined_call_operand.hbm [shape: bf16[128,512], index: 5, kind: input, shape index: {}]   ;;  %s3711_s6 = inlined_call_operand.vmem [shape: f32[1,512], index: 6, kind: input, shape index: {}]   ;;  %s3712_s7 = inlined_call_operand.hbm [shape: bf16[128,512], index: 7, kind: input, shape index: {}]   ;;  %s3713_s8 = inlined_call_operand.vmem [shape: f32[1,512], index: 8, kind: input, shape index: {}]   ;;  %s3714_s9 = inlined_call_operand.hbm [shape: bf16[512,128], index: 9, kind: input, shape index: {}]   ;;  %s3715_s10 = inlined_call_operand.vmem [shape: f32[1,128], index: 10, kind: input, shape index: {}]   ;;  %s3716_s11 = inlined_call_operand.hbm [shape: f32[2,128], index: 11, kind: output, shape index: {}]  }
   0x1   :  { %17 = vsyncpa [#allocation6], 0 }
   0x2   :  { %18 = vsyncpa [#allocation9], 0 }
   0x3   :  { %19 = vsyncpa [#allocation12], 0 }
   0x4   :  { %20 = vsyncpa [#allocation4], 0  ;;  %s3475_s17 = smov [#allocation5]  }
   0x5   :  { %s36_s18 = sshll.u32 %s3475_s17, 4  ;;  %s37_s18 = int_to_ptr.vmem [resolvable:$true] %s36_s18 }
   0x6   :  { %s3313_s19 = scalar_lea.vmem %s37_s18, 15360  ;;  %p3318_p1 = scmp.lt.s32.totalorder %s37_s18, %s37_s18 }
   0x7   :  { %p3314_p0 = scmp.ne.s32.totalorder %s37_s18, %s3313_s19  ;;  %p3319_p2 = scmp.lt.s32.totalorder %s3313_s19, %s3313_s19 }
   0x9   :  { %p3320_p3 = por %p3319_p2, %p3318_p1 }
   0xb   :  { %p3321_p4 = pnand %p3320_p3, %p3314_p0 }
   0xd   :  { %3324 = shalt.err (!%p3321_p4)
}
   0xe   :  { %s3476_s20 = smov 320   ;;  %s3477_s21 = smov 20  }
   0xf   :  { %42 = dma.hbm_to_vmem [thread:$0]  %s3706_s1, 15360, %s37_s18, [#allocation6], %s3476_s20, %s3476_s20, %s3477_s21  }
  0x10   :  { %s3478_s24 = smov [#allocation8]  }
  0x11   :  { %s58_s25 = sshll.u32 %s3478_s24, 4  ;;  %s59_s25 = int_to_ptr.vmem [resolvable:$true] %s58_s25 }
  0x12   :  { %s3333_s26 = scalar_lea.vmem %s59_s25, 4096  ;;  %p3338_p6 = scmp.lt.s32.totalorder %s59_s25, %s59_s25 }
  0x13   :  { %p3334_p5 = scmp.ne.s32.totalorder %s59_s25, %s3333_s26  ;;  %p3339_p7 = scmp.lt.s32.totalorder %s3333_s26, %s3333_s26 }
  0x15   :  { %p3340_p8 = por %p3339_p7, %p3338_p6 }
  0x17   :  { %p3341_p9 = pnand %p3340_p8, %p3334_p5 }
  0x19   :  { %3344 = shalt.err (!%p3341_p9)
}
  0x1a   :  { %s3479_s27 = smov 256   ;;  %s3480_s28 = smov 16  }
  0x1b   :  { %64 = dma.hbm_to_vmem [thread:$0]  %s3708_s3, 4096, %s59_s25, [#allocation9], %s3479_s27, %s3479_s27, %s3480_s28  }
  0x1c   :  { %s3481_s1 = smov [#allocation11]   ;;  %s3482_s13 = smov [#allocation2]  }
  0x1d   :  { %s86_s12 = sshll.u32 %s3481_s1, 4  ;;  %s27_s14 = sshll.u32 %s3482_s13, 4  ;;  %s87_s12 = int_to_ptr.vmem [resolvable:$true] %s86_s12  ;;  %s28_s14 = int_to_ptr.vmem [resolvable:$true] %s27_s14 }
  0x1e   :  { %s3353_s15 = scalar_lea.vmem %s87_s12, 4096  ;;  %p3358_p11 = scmp.lt.s32.totalorder %s87_s12, %s87_s12 }
  0x1f   :  { %p3354_p10 = scmp.ne.s32.totalorder %s87_s12, %s3353_s15  ;;  %p3359_p12 = scmp.lt.s32.totalorder %s3353_s15, %s3353_s15 }
  0x21   :  { %p3360_p13 = por %p3359_p12, %p3358_p11 }
  0x23   :  { %p3361_p0 = pnand %p3360_p13, %p3354_p10 }
  0x25   :  { %3364 = shalt.err (!%p3361_p0)
}
  0x26   :  { %92 = dma.hbm_to_vmem [thread:$0]  %s3712_s7, 4096, %s87_s12, [#allocation12], %s3479_s27, %s3479_s27, %s3480_s28  }
  0x27   :  { %s3373_s3 = scalar_lea.vmem %s28_s14, 384  ;;  %p3378_p2 = scmp.lt.s32.totalorder %s28_s14, %s28_s14 }
  0x28   :  { %p3374_p1 = scmp.ne.s32.totalorder %s28_s14, %s3373_s3  ;;  %p3379_p3 = scmp.lt.s32.totalorder %s3373_s3, %s3373_s3 }
  0x2a   :  { %p3380_p4 = por %p3379_p3, %p3378_p2 }
  0x2c   :  { %p3381_p5 = pnand %p3380_p4, %p3374_p1 }
  0x2e   :  { %3384 = shalt.err (!%p3381_p5)
}
  0x2f   :  { %30 = dma.hbm_to_vmem [thread:$0]  %s3705_s0, 384, %s28_s14, [#allocation3]  }
  0x30   :  { %s3483_s20 = smov [#allocation7]   ;;  %s3484_s22 = smov [#allocation10]  }
  0x31   :  { %s49_s21 = sshll.u32 %s3483_s20, 4  ;;  %s72_s23 = sshll.u32 %s3484_s22, 4  ;;  %s50_s21 = int_to_ptr.vmem [resolvable:$true] %s49_s21  ;;  %s73_s23 = int_to_ptr.vmem [resolvable:$true] %s72_s23 }
  0x32   :  { %s3393_s24 = scalar_lea.vmem %s50_s21, 80  ;;  %s3397_s7 = scalar_lea.vmem %s50_s21, 96 }
  0x33   :  { %p3394_p6 = scmp.ne.s32.totalorder %s50_s21, %s3393_s24  ;;  %p3398_p7 = scmp.lt.s32.totalorder %s50_s21, %s50_s21 }
  0x34   :  { %p3399_p8 = scmp.lt.s32.totalorder %s3397_s7, %s3393_s24 }
  0x36   :  { %p3400_p9 = por %p3399_p8, %p3398_p7 }
  0x38   :  { %p3401_p10 = pnand %p3400_p9, %p3394_p6 }
  0x3a   :  { %3404 = shalt.err (!%p3401_p10)
}
  0x3b   :  { %52 = dma.hbm_to_vmem [thread:$0]  %s3707_s2, 80, %s50_s21, [#allocation6]  }
  0x3c   :  { %s3413_s29 = scalar_lea.vmem %s73_s23, 4096  ;;  %p3418_p12 = scmp.lt.s32.totalorder %s73_s23, %s73_s23 }
  0x3d   :  { %p3414_p11 = scmp.ne.s32.totalorder %s73_s23, %s3413_s29  ;;  %p3419_p13 = scmp.lt.s32.totalorder %s3413_s29, %s3413_s29 }
  0x3f   :  { %p3420_p0 = por %p3419_p13, %p3418_p12 }
  0x41   :  { %p3421_p1 = pnand %p3420_p0, %p3414_p11 }
  0x43   :  { %3424 = shalt.err (!%p3421_p1)
}
  0x44   :  { %78 = dma.hbm_to_vmem [thread:$0]  %s3710_s5, 4096, %s73_s23, [#allocation9], %s3479_s27, %s3479_s27, %s3480_s28  }
  0x45   :  { %s3485_s1 = smov [#allocation13]  }
  0x46   :  { %s100_s12 = sshll.u32 %s3485_s1, 4  ;;  %s101_s12 = int_to_ptr.vmem [resolvable:$true] %s100_s12 }
  0x47   :  { %s3433_s13 = scalar_lea.vmem %s101_s12, 4096  ;;  %p3438_p3 = scmp.lt.s32.totalorder %s101_s12, %s101_s12 }
  0x48   :  { %p3434_p2 = scmp.ne.s32.totalorder %s101_s12, %s3433_s13  ;;  %p3439_p4 = scmp.lt.s32.totalorder %s3433_s13, %s3433_s13 }
  0x4a   :  { %p3440_p5 = por %p3439_p4, %p3438_p3 }
  0x4c   :  { %p3441_p6 = pnand %p3440_p5, %p3434_p2 }
  0x4e   :  { %3444 = shalt.err (!%p3441_p6)
}
  0x4f   :  { %s3486_s2 = smov 64   ;;  %s3487_s14 = smov 4  }
  0x50   :  { %106 = dma.hbm_to_vmem [thread:$0]  %s3714_s9, 4096, %s101_s12, [#allocation12], %s3486_s2, %s3486_s2, %s3487_s14  }
  0x51   :  { %3465 = dma.done.wait [#allocation3], 384  }
  0x52   :  { %3466 = vsyncadd [#allocation3], 4294966912 }
  0x53   :  { %3467 = dma.done.wait [#allocation6], 15440  }
  0x54   :  { %3468 = vsyncadd [#allocation6], 4294951856 }
  0x55   :  { %3469 = dma.done.wait [#allocation9], 8192  }
  0x56   :  { %3470 = vsyncadd [#allocation9], 4294959104 }
  0x57   :  { %3471 = dma.done.wait [#allocation12], 8192  }
  0x58   :  { %3472 = vsyncadd [#allocation12], 4294959104  ;;  %v3488_v0 = vmov 0   ;;  %v2954_v1 = vld [vmem:[#allocation5 + $0x11c] ss:$20 sps:$4 sm:$0xff]   ;;  %vm3490_vm0 = vmmov 0  }
  0x59   :  { %1005 = vmatprep.mubr.bf16.mxu1 %v3488_v0  ;;  %2937 = vset.pattern.permute.xlu0 %v3488_v0  ;;  %v2956_v2 = vld [vmem:[#allocation5 + $0x39c] ss:$20 sps:$4 sm:$0xff]   ;;  %v2958_v3 = vld [vmem:[#allocation5 + $0x118] ss:$20 sps:$4 sm:$0xff]   ;;  %v2960_v5 = vld [vmem:[#allocation5 + $0xf4] ss:$20 sps:$4 sm:$0xff]  }
  0x5a   :  { %932 = vmatprep.subr.bf16.mxu0 %v2954_v1  ;;  %v2959_v4 = vld [vmem:[#allocation5 + $0x398] ss:$20 sps:$4 sm:$0xff]   ;;  %973 = vmatprep.subr.bf16.mxu1 %v2956_v2  ;;  %v2962_v6 = vld [vmem:[#allocation5 + $0x374] ss:$20 sps:$4 sm:$0xff]   ;;  %v2964_v7 = vld [vmem:[#allocation5 + $0xf0] ss:$20 sps:$4 sm:$0xff]  }
  0x5b   :  { %933 = vmatpush1.bf16.msra.mxu0 %v2958_v3  ;;  %974 = vmatpush1.bf16.msra.mxu1 %v2959_v4  ;;  %v2965_v8 = vld [vmem:[#allocation5 + $0x370] ss:$20 sps:$4 sm:$0xff]   ;;  %v2966_v9 = vld [vmem:[#allocation5 + $0xcc] ss:$20 sps:$4 sm:$0xff]   ;;  %v2970_v11 = vld [vmem:[#allocation5 + $0xc8] ss:$20 sps:$4 sm:$0xff]  }
  0x5c   :  { %934 = vmatprep.subr.bf16.mxu0 %v2960_v5  ;;  %975 = vmatprep.subr.bf16.mxu1 %v2962_v6  ;;  %v2968_v10 = vld [vmem:[#allocation5 + $0x34c] ss:$20 sps:$4 sm:$0xff]   ;;  %v2971_v12 = vld [vmem:[#allocation5 + $0x348] ss:$20 sps:$4 sm:$0xff]   ;;  %v2972_v13 = vld [vmem:[#allocation5 + $0xa4] ss:$20 sps:$4 sm:$0xff]  }
  0x5d   :  { %v2974_v14 = vld [vmem:[#allocation5 + $0x324] ss:$20 sps:$4 sm:$0xff]   ;;  %v2976_v15 = vld [vmem:[#allocation5 + $0xa0] ss:$20 sps:$4 sm:$0xff]   ;;  %v2978_v17 = vld [vmem:[#allocation5 + $0x7c] ss:$20 sps:$4 sm:$0xff]  }
  0x5e   :  { %v2977_v16 = vld [vmem:[#allocation5 + $0x320] ss:$20 sps:$4 sm:$0xff]   ;;  %v2980_v18 = vld [vmem:[#allocation5 + $0x2fc] ss:$20 sps:$4 sm:$0xff]   ;;  %v2982_v19 = vld [vmem:[#allocation5 + $0x78] ss:$20 sps:$4 sm:$0xff]  }
  0x5f   :  { %935 = vmatpush1.bf16.msra.mxu0 %v2964_v7  ;;  %976 = vmatpush1.bf16.msra.mxu1 %v2965_v8  ;;  %v2983_v20 = vld [vmem:[#allocation5 + $0x2f8] ss:$20 sps:$4 sm:$0xff]   ;;  %v2984_v21 = vld [vmem:[#allocation5 + $0x54] ss:$20 sps:$4 sm:$0xff]   ;;  %v2988_v23 = vld [vmem:[#allocation5 + $0x50] ss:$20 sps:$4 sm:$0xff]  }
  0x60   :  { %936 = vmatprep.subr.bf16.mxu0 %v2966_v9  ;;  %977 = vmatprep.subr.bf16.mxu1 %v2968_v10  ;;  %v2986_v22 = vld [vmem:[#allocation5 + $0x2d4] ss:$20 sps:$4 sm:$0xff]   ;;  %v2989_v24 = vld [vmem:[#allocation5 + $0x2d0] ss:$20 sps:$4 sm:$0xff]   ;;  %v2990_v25 = vld [vmem:[#allocation5 + $0x2c] ss:$20 sps:$4 sm:$0xff]  }
  0x61   :  { %v2992_v26 = vld [vmem:[#allocation5 + $0x2ac] ss:$20 sps:$4 sm:$0xff]   ;;  %v2994_v27 = vld [vmem:[#allocation5 + $0x28] ss:$20 sps:$4 sm:$0xff]   ;;  %v2996_v29 = vld [vmem:[#allocation5 + $0x4] ss:$20 sps:$4 sm:$0xff]  }
  0x62   :  { %v2995_v28 = vld [vmem:[#allocation5 + $0x2a8] ss:$20 sps:$4 sm:$0xff]   ;;  %v2998_v30 = vld [vmem:[#allocation5 + $0x284] ss:$20 sps:$4 sm:$0xff]   ;;  %v3000_v31 = vld [vmem:[#allocation5] ss:$20 sps:$4 sm:$0xff]  }
  0x63   :  { %937 = vmatpush1.bf16.msra.mxu0 %v2970_v11  ;;  %978 = vmatpush1.bf16.msra.mxu1 %v2971_v12  ;;  %v3001_v32 = vld [vmem:[#allocation5 + $0x280] ss:$20 sps:$4 sm:$0xff]   ;;  %v133_v33 = vld [vmem:[#allocation2 + $0x10] sm:$0xff]  ;;  %v3013_v42 = vld [vmem:[#allocation5 + $0x230] ss:$20 sps:$4 sm:$0xff]   ;;  %vm2540_vm1 = vcmask 1040384  }
  0x64   :  { %938 = vmatprep.subr.bf16.mxu0 %v2972_v13  ;;  %979 = vmatprep.subr.bf16.mxu1 %v2974_v14  ;;  %v3002_v34 = vld [vmem:[#allocation5 + $0x25c] ss:$20 sps:$4 sm:$0xff]   ;;  %v3006_v35 = vld [vmem:[#allocation5 + $0x124] ss:$20 sps:$4 sm:$0xff]   ;;  %v3004_v36 = vld [vmem:[#allocation5 + $0x120] ss:$20 sps:$4 sm:$0xff]   ;;  %v3599_v38 = vpack.c.bf16 %v133_v33, %v133_v33 }
  0x65   :  { %v3007_v37 = vld [vmem:[#allocation5 + $0x258] ss:$20 sps:$4 sm:$0xff]   ;;  %v3008_v39 = vld [vmem:[#allocation5 + $0x234] ss:$20 sps:$4 sm:$0xff]   ;;  %v3012_v40 = vld [vmem:[#allocation5 + $0xfc] ss:$20 sps:$4 sm:$0xff]  }
  0x66   :  { %v3010_v41 = vld [vmem:[#allocation5 + $0xf8] ss:$20 sps:$4 sm:$0xff]   ;;  %v3018_v44 = vld [vmem:[#allocation5 + $0xd4] ss:$20 sps:$4 sm:$0xff]   ;;  %v3016_v45 = vld [vmem:[#allocation5 + $0xd0] ss:$20 sps:$4 sm:$0xff]  }
  0x67   :  { %939 = vmatpush1.bf16.msra.mxu0 %v2976_v15  ;;  %980 = vmatpush1.bf16.msra.mxu1 %v2977_v16  ;;  %v3014_v43 = vld [vmem:[#allocation5 + $0x20c] ss:$20 sps:$4 sm:$0xff]   ;;  %v3019_v46 = vld [vmem:[#allocation5 + $0x208] ss:$20 sps:$4 sm:$0xff]   ;;  %v3020_v47 = vld [vmem:[#allocation5 + $0x1e4] ss:$20 sps:$4 sm:$0xff]  }
  0x68   :  { %940 = vmatprep.subr.bf16.mxu0 %v2978_v17  ;;  %981 = vmatprep.subr.bf16.mxu1 %v2980_v18  ;;  %v3024_v48 = vld [vmem:[#allocation5 + $0xac] ss:$20 sps:$4 sm:$0xff]   ;;  %v3022_v49 = vld [vmem:[#allocation5 + $0xa8] ss:$20 sps:$4 sm:$0xff]   ;;  %v132_v50 = vld [vmem:[#allocation2 + $0x8] sm:$0xff] }
  0x69   :  { %v3025_v51 = vld [vmem:[#allocation5 + $0x1e0] ss:$20 sps:$4 sm:$0xff]   ;;  %v3026_v52 = vld [vmem:[#allocation5 + $0x1bc] ss:$20 sps:$4 sm:$0xff]   ;;  %v3602_v53 = vpack.c.bf16 %v132_v50, %v132_v50  ;;  %v3030_v54 = vld [vmem:[#allocation5 + $0x84] ss:$20 sps:$4 sm:$0xff]  }
  0x6a   :  { %v3028_v55 = vld [vmem:[#allocation5 + $0x80] ss:$20 sps:$4 sm:$0xff]   ;;  %v3031_v56 = vld [vmem:[#allocation5 + $0x1b8] ss:$20 sps:$4 sm:$0xff]   ;;  %v3036_v58 = vld [vmem:[#allocation5 + $0x5c] ss:$20 sps:$4 sm:$0xff]  }
  0x6b   :  { %941 = vmatpush1.bf16.msra.mxu0 %v2982_v19  ;;  %982 = vmatpush1.bf16.msra.mxu1 %v2983_v20  ;;  %v3032_v57 = vld [vmem:[#allocation5 + $0x194] ss:$20 sps:$4 sm:$0xff]   ;;  %v3034_v59 = vld [vmem:[#allocation5 + $0x58] ss:$20 sps:$4 sm:$0xff]   ;;  %v3037_v60 = vld [vmem:[#allocation5 + $0x190] ss:$20 sps:$4 sm:$0xff]  }
  0x6c   :  { %942 = vmatprep.subr.bf16.mxu0 %v2984_v21  ;;  %983 = vmatprep.subr.bf16.mxu1 %v2986_v22  ;;  %v3038_v61 = vld [vmem:[#allocation5 + $0x16c] ss:$20 sps:$4 sm:$0xff]   ;;  %v3042_v62 = vld [vmem:[#allocation5 + $0x34] ss:$20 sps:$4 sm:$0xff]   ;;  %v3040_v63 = vld [vmem:[#allocation5 + $0x30] ss:$20 sps:$4 sm:$0xff]  }
  0x6d   :  { %964 = vmatprep.mubr.bf16.mxu0 %v3602_v53  ;;  %v3043_v1 = vld [vmem:[#allocation5 + $0x168] ss:$20 sps:$4 sm:$0xff]   ;;  %v3044_v2 = vld [vmem:[#allocation5 + $0x144] ss:$20 sps:$4 sm:$0xff]   ;;  %v3048_v3 = vld [vmem:[#allocation5 + $0xc] ss:$20 sps:$4 sm:$0xff]  }
  0x6e   :  { %v3046_v4 = vld [vmem:[#allocation5 + $0x8] ss:$20 sps:$4 sm:$0xff]   ;;  %v3049_v5 = vld [vmem:[#allocation5 + $0x140] ss:$20 sps:$4 sm:$0xff]   ;;  %v3052_v7 = vld [vmem:[#allocation5 + $0x264] ss:$20 sps:$4 sm:$0xff]  }
  0x6f   :  { %943 = vmatpush1.bf16.msra.mxu0 %v2988_v23  ;;  %984 = vmatpush1.bf16.msra.mxu1 %v2989_v24  ;;  %v131_v6 = vld [vmem:[#allocation2] sm:$0xff]  ;;  %v3055_v8 = vld [vmem:[#allocation5 + $0x3a4] ss:$20 sps:$4 sm:$0xff]   ;;  %v3050_v10 = vld [vmem:[#allocation5 + $0x260] ss:$20 sps:$4 sm:$0xff]  }
  0x70   :  { %944 = vmatprep.subr.bf16.mxu0 %v2990_v25  ;;  %985 = vmatprep.subr.bf16.mxu1 %v2992_v26  ;;  %v3606_v9 = vpack.c.bf16 %v131_v6, %v131_v6  ;;  %v3053_v11 = vld [vmem:[#allocation5 + $0x3a0] ss:$20 sps:$4 sm:$0xff]   ;;  %v3058_v12 = vld [vmem:[#allocation5 + $0x23c] ss:$20 sps:$4 sm:$0xff]   ;;  %v3056_v14 = vld [vmem:[#allocation5 + $0x238] ss:$20 sps:$4 sm:$0xff]  }
  0x71   :  { %v3061_v13 = vld [vmem:[#allocation5 + $0x37c] ss:$20 sps:$4 sm:$0xff]   ;;  %v3059_v15 = vld [vmem:[#allocation5 + $0x378] ss:$20 sps:$4 sm:$0xff]   ;;  %v3064_v16 = vld [vmem:[#allocation5 + $0x214] ss:$20 sps:$4 sm:$0xff]  }
  0x72   :  { %v3067_v17 = vld [vmem:[#allocation5 + $0x354] ss:$20 sps:$4 sm:$0xff]   ;;  %v3062_v18 = vld [vmem:[#allocation5 + $0x210] ss:$20 sps:$4 sm:$0xff]   ;;  %v3070_v20 = vld [vmem:[#allocation5 + $0x1ec] ss:$20 sps:$4 sm:$0xff]  }
  0x73   :  { %945 = vmatpush1.bf16.msra.mxu0 %v2994_v27  ;;  %986 = vmatpush1.bf16.msra.mxu1 %v2995_v28  ;;  %v3065_v19 = vld [vmem:[#allocation5 + $0x350] ss:$20 sps:$4 sm:$0xff]   ;;  %v3073_v21 = vld [vmem:[#allocation5 + $0x32c] ss:$20 sps:$4 sm:$0xff]   ;;  %v3068_v22 = vld [vmem:[#allocation5 + $0x1e8] ss:$20 sps:$4 sm:$0xff]  }
  0x74   :  { %946 = vmatprep.subr.bf16.mxu0 %v2996_v29  ;;  %987 = vmatprep.subr.bf16.mxu1 %v2998_v30  ;;  %v3071_v23 = vld [vmem:[#allocation5 + $0x328] ss:$20 sps:$4 sm:$0xff]   ;;  %v3076_v24 = vld [vmem:[#allocation5 + $0x1c4] ss:$20 sps:$4 sm:$0xff]   ;;  %v3074_v26 = vld [vmem:[#allocation5 + $0x1c0] ss:$20 sps:$4 sm:$0xff]  }
  0x75   :  { %v3079_v25 = vld [vmem:[#allocation5 + $0x304] ss:$20 sps:$4 sm:$0xff]   ;;  %v3077_v27 = vld [vmem:[#allocation5 + $0x300] ss:$20 sps:$4 sm:$0xff]   ;;  %v3082_v28 = vld [vmem:[#allocation5 + $0x19c] ss:$20 sps:$4 sm:$0xff]  }
  0x76   :  { %v3085_v29 = vld [vmem:[#allocation5 + $0x2dc] ss:$20 sps:$4 sm:$0xff]   ;;  %v3080_v30 = vld [vmem:[#allocation5 + $0x198] ss:$20 sps:$4 sm:$0xff]   ;;  %v3091_v33 = vld [vmem:[#allocation5 + $0x2b4] ss:$20 sps:$4 sm:$0xff]  }
  0x77   :  { %947 = vmatpush1.bf16.msra.mxu0 %v3000_v31  ;;  %988 = vmatpush1.bf16.msra.mxu1 %v3001_v32  ;;  %v3083_v31 = vld [vmem:[#allocation5 + $0x2d8] ss:$20 sps:$4 sm:$0xff]   ;;  %v3088_v32 = vld [vmem:[#allocation5 + $0x174] ss:$20 sps:$4 sm:$0xff]  }
  0x78   :  { %948 = vmatprep.subr.bf16.mxu0 %v3002_v34  ;;  %1014 = vmatprep.subr.bf16.mxu1 %v3006_v35  ;;  %v3086_v34 = vld [vmem:[#allocation5 + $0x170] ss:$20 sps:$4 sm:$0xff]   ;;  %v3106_v50 = vld [vmem:[#allocation5 + $0x358] ss:$20 sps:$4 sm:$0xff]  }
  0x79   :  { %v3089_v35 = vld [vmem:[#allocation5 + $0x2b0] ss:$20 sps:$4 sm:$0xff]  }
  0x7a   :  { %1006 = vmatmul.mubr.bf16.vlgmr.msra.gmra.mxu1 %v3599_v38 }
  0x7b   :  { %949 = vmatpush2.bf16.msra.mxu0 %v3007_v37  ;;  %1015 = vmatpush1.bf16.msra.mxu1 %v3004_v36  ;;  %v3094_v36 = vld [vmem:[#allocation5 + $0x14c] ss:$20 sps:$4 sm:$0xff]  }
  0x7c   :  { %950 = vmatprep.subr.bf16.mxu0 %v3008_v39  ;;  %1016 = vmatprep.subr.bf16.mxu1 %v3012_v40  ;;  %v3097_v37 = vld [vmem:[#allocation5 + $0x28c] ss:$20 sps:$4 sm:$0xff]   ;;  %v3092_v39 = vld [vmem:[#allocation5 + $0x148] ss:$20 sps:$4 sm:$0xff]  }
  0x7d   :  { %1046 = vmatprep.mubr.bf16.mxu1 %v3602_v53  ;;  %v3095_v40 = vld [vmem:[#allocation5 + $0x288] ss:$20 sps:$4 sm:$0xff]  }
  0x7f   :  { %951 = vmatpush2.bf16.msra.mxu0 %v3013_v42  ;;  %1017 = vmatpush1.bf16.msra.mxu1 %v3010_v41  ;;  %v3098_v41 = vld [vmem:[#allocation5 + $0x268] ss:$20 sps:$4 sm:$0xff]  }
  0x80   :  { %952 = vmatprep.subr.bf16.mxu0 %v3014_v43  ;;  %1018 = vmatprep.subr.bf16.mxu1 %v3018_v44  ;;  %v3099_v42 = vld [vmem:[#allocation5 + $0x128] ss:$20 sps:$4 sm:$0xff]   ;;  %v3101_v44 = vld [vmem:[#allocation5 + $0x240] ss:$20 sps:$4 sm:$0xff]  }
  0x81   :  { %v3100_v43 = vld [vmem:[#allocation5 + $0x3a8] ss:$20 sps:$4 sm:$0xff]  }
  0x83   :  { %953 = vmatpush2.bf16.msra.mxu0 %v3019_v46  ;;  %1019 = vmatpush1.bf16.msra.mxu1 %v3016_v45  ;;  %v3489_v45 = vmov 0.0   ;;  %v3102_v46 = vld [vmem:[#allocation5 + $0x100] ss:$20 sps:$4 sm:$0xff]  }
  0x84   :  { %954 = vmatprep.subr.bf16.mxu0 %v3020_v47  ;;  %1020 = vmatprep.subr.bf16.mxu1 %v3024_v48  ;;  %v3103_v47 = vld [vmem:[#allocation5 + $0x380] ss:$20 sps:$4 sm:$0xff]   ;;  %v3104_v48 = vld [vmem:[#allocation5 + $0x218] ss:$20 sps:$4 sm:$0xff]  }
  0x87   :  { %955 = vmatpush2.bf16.msra.mxu0 %v3025_v51  ;;  %1021 = vmatpush1.bf16.msra.mxu1 %v3022_v49  ;;  %v3105_v49 = vld [vmem:[#allocation5 + $0xd8] ss:$20 sps:$4 sm:$0xff]   ;;  %v3107_v51 = vld [vmem:[#allocation5 + $0x1f0] ss:$20 sps:$4 sm:$0xff]  }
  0x88   :  { %956 = vmatprep.subr.bf16.mxu0 %v3026_v52  ;;  %1022 = vmatprep.subr.bf16.mxu1 %v3030_v54  ;;  %v3108_v52 = vld [vmem:[#allocation5 + $0xb0] ss:$20 sps:$4 sm:$0xff]  }
  0x89   :  { %v3109_v54 = vld [vmem:[#allocation5 + $0x330] ss:$20 sps:$4 sm:$0xff]  }
  0x8b   :  { %957 = vmatpush2.bf16.msra.mxu0 %v3031_v56  ;;  %1023 = vmatpush1.bf16.msra.mxu1 %v3028_v55  ;;  %v3110_v55 = vld [vmem:[#allocation5 + $0x1c8] ss:$20 sps:$4 sm:$0xff]  }
  0x8c   :  { %958 = vmatprep.subr.bf16.mxu0 %v3032_v57  ;;  %1024 = vmatprep.subr.bf16.mxu1 %v3036_v58  ;;  %v3111_v56 = vld [vmem:[#allocation5 + $0x88] ss:$20 sps:$4 sm:$0xff]   ;;  %v3113_v58 = vld [vmem:[#allocation5 + $0x1a0] ss:$20 sps:$4 sm:$0xff]  }
  0x8d   :  { %v3112_v57 = vld [vmem:[#allocation5 + $0x308] ss:$20 sps:$4 sm:$0xff]  }
  0x8f   :  { %959 = vmatpush2.bf16.msra.mxu0 %v3037_v60  ;;  %1025 = vmatpush1.bf16.msra.mxu1 %v3034_v59  ;;  %v3115_v59 = vld [vmem:[#allocation5 + $0x2e0] ss:$20 sps:$4 sm:$0xff]   ;;  %v3116_v60 = vld [vmem:[#allocation5 + $0x178] ss:$20 sps:$4 sm:$0xff]  }
  0x90   :  { %960 = vmatprep.subr.bf16.mxu0 %v3038_v61  ;;  %1026 = vmatprep.subr.bf16.mxu1 %v3042_v62  ;;  %v3117_v61 = vld [vmem:[#allocation5 + $0x38] ss:$20 sps:$4 sm:$0xff]  }
  0x91   :  { %v3118_v62 = vld [vmem:[#allocation5 + $0x2b8] ss:$20 sps:$4 sm:$0xff]  }
  0x93   :  { %961 = vmatpush2.bf16.msra.mxu0 %v3043_v1  ;;  %1027 = vmatpush1.bf16.msra.mxu1 %v3040_v63  ;;  %v3119_v63 = vld [vmem:[#allocation5 + $0x150] ss:$20 sps:$4 sm:$0xff]  }
  0x94   :  { %962 = vmatprep.subr.bf16.mxu0 %v3044_v2  ;;  %1028 = vmatprep.subr.bf16.mxu1 %v3048_v3  ;;  %v3120_v1 = vld [vmem:[#allocation5 + $0x10] ss:$20 sps:$4 sm:$0xff]   ;;  %v3491_v3 = vmov 2  }
  0x95   :  { %v3121_v2 = vld [vmem:[#allocation5 + $0x290] ss:$20 sps:$4 sm:$0xff]   ;;  %2939 = vset.pattern.permute.xlu1 %v3491_v3 }
  0x96   :  { %v3146_v3 = vld [vmem:[#allocation8 + $0x60] ss:$16 sps:$4 sm:$0xff]  }
  0x97   :  { %963 = vmatpush2.bf16.msra.mxu0 %v3049_v5  ;;  %1029 = vmatpush1.bf16.msra.mxu1 %v3046_v4 }
  0x98   :  { %1030 = vmatprep.subr.bf16.mxu1 %v3052_v7  ;;  %1055 = vmatprep.subr.bf16.mxu0 %v3055_v8  ;;  %v283_v8 = vlaneseq }
  0x9a   :  { %965 = vmatmul.mubr.bf16.vlgmr.msra.gmra.mxu0 %v3606_v9 }
  0x9b   :  { %1031 = vmatpush2.bf16.msra.mxu1 %v3050_v10  ;;  %1056 = vmatpush1.bf16.msra.mxu0 %v3053_v11  ;;  %v3617_v10 = vshrl.u32 %v283_v8, 7  ;;  %v3122_v11 = vld [vmem:[#allocation8 + $0xe0] ss:$16 sps:$4 sm:$0xff]  }
  0x9c   :  { %1032 = vmatprep.subr.bf16.mxu1 %v3058_v12  ;;  %1057 = vmatprep.subr.bf16.mxu0 %v3061_v13  ;;  %v3124_v12 = vld [vmem:[#allocation8 + $0xe4] ss:$16 sps:$4 sm:$0xff]   ;;  %v3125_v13 = vld [vmem:[#allocation8 + $0xe8] ss:$16 sps:$4 sm:$0xff]  }
  0x9d   :  { %1087 = vmatprep.mubr.bf16.mxu0 %v3488_v0 }
  0x9f   :  { %1033 = vmatpush2.bf16.msra.mxu1 %v3056_v14  ;;  %1058 = vmatpush1.bf16.msra.mxu0 %v3059_v15  ;;  %v3127_v14 = vld [vmem:[#allocation8 + $0xec] ss:$16 sps:$4 sm:$0xff]   ;;  %v3620_v15 = vsub.s32 0, %v3617_v10 }
  0xa0   :  { %1034 = vmatprep.subr.bf16.mxu1 %v3064_v16  ;;  %1059 = vmatprep.subr.bf16.mxu0 %v3067_v17  ;;  %v3128_v16 = vld [vmem:[#allocation8 + $0xc0] ss:$16 sps:$4 sm:$0xff]   ;;  %v281_v17 = vld [vmem:[#allocation7] sm:$0x1f] }
  0xa3   :  { %1035 = vmatpush2.bf16.msra.mxu1 %v3062_v18  ;;  %1060 = vmatpush1.bf16.msra.mxu0 %v3065_v19  ;;  %v3131_v18 = vld [vmem:[#allocation8 + $0xc8] ss:$16 sps:$4 sm:$0xff]   ;;  %v3136_v19 = vld [vmem:[#allocation8 + $0xa4] ss:$16 sps:$4 sm:$0xff]  }
  0xa4   :  { %1036 = vmatprep.subr.bf16.mxu1 %v3070_v20  ;;  %1061 = vmatprep.subr.bf16.mxu0 %v3073_v21  ;;  %v3623_v20 = vsub.s32 1, %v3617_v10  ;;  %v3139_v21 = vld [vmem:[#allocation8 + $0xac] ss:$16 sps:$4 sm:$0xff]  }
  0xa7   :  { %1037 = vmatpush2.bf16.msra.mxu1 %v3068_v22  ;;  %1062 = vmatpush1.bf16.msra.mxu0 %v3071_v23  ;;  %v286_v22 = vrot.slane %v281_v17, %v3620_v15  ;;  %v3134_v23 = vld [vmem:[#allocation8 + $0xa0] ss:$16 sps:$4 sm:$0xff]  }
  0xa8   :  { %1038 = vmatprep.subr.bf16.mxu1 %v3076_v24  ;;  %1063 = vmatprep.subr.bf16.mxu0 %v3079_v25  ;;  %v3137_v24 = vld [vmem:[#allocation8 + $0xa8] ss:$16 sps:$4 sm:$0xff]   ;;  %v3142_v25 = vld [vmem:[#allocation8 + $0x84] ss:$16 sps:$4 sm:$0xff]  }
  0xab   :  { %1039 = vmatpush2.bf16.msra.mxu1 %v3074_v26  ;;  %1064 = vmatpush1.bf16.msra.mxu0 %v3077_v27  ;;  %v290_v26 = vrot.slane %v281_v17, %v3623_v20  ;;  %v3145_v27 = vld [vmem:[#allocation8 + $0x8c] ss:$16 sps:$4 sm:$0xff]  }
  0xac   :  { %1040 = vmatprep.subr.bf16.mxu1 %v3082_v28  ;;  %1065 = vmatprep.subr.bf16.mxu0 %v3085_v29 }
  0xaf   :  { %1041 = vmatpush2.bf16.msra.mxu1 %v3080_v30  ;;  %1066 = vmatpush1.bf16.msra.mxu0 %v3083_v31  ;;  %v3140_v30 = vld [vmem:[#allocation8 + $0x80] ss:$16 sps:$4 sm:$0xff]  }
  0xb0   :  { %1042 = vmatprep.subr.bf16.mxu1 %v3088_v32  ;;  %1067 = vmatprep.subr.bf16.mxu0 %v3091_v33  ;;  %v3143_v32 = vld [vmem:[#allocation8 + $0x88] ss:$16 sps:$4 sm:$0xff]  }
  0xb3   :  { %1043 = vmatpush2.bf16.msra.mxu1 %v3086_v34  ;;  %1068 = vmatpush1.bf16.msra.mxu0 %v3089_v35 }
  0xb4   :  { %1044 = vmatprep.subr.bf16.mxu1 %v3094_v36  ;;  %1069 = vmatprep.subr.bf16.mxu0 %v3097_v37 }
  0xb7   :  { %1045 = vmatpush2.bf16.msra.mxu1 %v3092_v39  ;;  %1070 = vmatpush1.bf16.msra.mxu0 %v3095_v40  ;;  %v3632_v39 = vsub.s32 2, %v3617_v10  ;;  %v3635_v40 = vsub.s32 3, %v3617_v10 }
  0xb8   :  { %2810 = vmatprep.subr.bf16.mxu0 %v3098_v41  ;;  %2885 = vmatprep.subr.bf16.mxu1 %v3489_v45 }
  0xb9   :  { %v294_v41 = vrot.slane %v281_v17, %v3632_v39 }
  0xba   :  { %1047 = vmatmul.mubr.bf16.vlgmr.msra.gmra.mxu1 %v3606_v9  ;;  %1088 = vmatmul.mubr.bf16.vlgmr.msra.gmra.mxu0 %v3599_v38 }
  0xbb   :  { %2811 = vmatpush3.bf16.msra.mxu0 %v3099_v42  ;;  %2886 = vmatpush3.bf16.msra.mxu1 %v3100_v43  ;;  %v298_v42 = vrot.slane %v281_v17, %v3635_v40 }
  0xbc   :  { %2812 = vmatprep.subr.bf16.mxu0 %v3101_v44  ;;  %2887 = vmatprep.subr.bf16.mxu1 %v3489_v45 }
  0xbd   :  { %1128 = vmatprep.mubr.bf16.mxu0 %v3602_v53  ;;  %2901 = vmatprep.mubr.msk.bf16.mxu1 %vm3490_vm0, %v3489_v45  ;;  %v3114_v53 = vld [vmem:[#allocation5 + $0x60] ss:$20 sps:$4 sm:$0xff]  }
  0xbf   :  { %2813 = vmatpush3.bf16.msra.mxu0 %v3102_v46  ;;  %2888 = vmatpush3.bf16.msra.mxu1 %v3103_v47 }
  0xc0   :  { %2814 = vmatprep.subr.bf16.mxu0 %v3104_v48  ;;  %2889 = vmatprep.subr.bf16.mxu1 %v3489_v45 }
  0xc3   :  { %2815 = vmatpush3.bf16.msra.mxu0 %v3105_v49  ;;  %2890 = vmatpush3.bf16.msra.mxu1 %v3106_v50 }
  0xc4   :  { %2816 = vmatprep.subr.bf16.mxu0 %v3107_v51  ;;  %2891 = vmatprep.subr.bf16.mxu1 %v3489_v45 }
  0xc7   :  { %2817 = vmatpush3.bf16.msra.mxu0 %v3108_v52  ;;  %2892 = vmatpush3.bf16.msra.mxu1 %v3109_v54 }
  0xc8   :  { %2818 = vmatprep.subr.bf16.mxu0 %v3110_v55  ;;  %2893 = vmatprep.subr.bf16.mxu1 %v3489_v45 }
  0xcb   :  { %2819 = vmatpush3.bf16.msra.mxu0 %v3111_v56  ;;  %2894 = vmatpush3.bf16.msra.mxu1 %v3112_v57  ;;  %v301_v56 = vsub.s32 4, %v3617_v10  ;;  %v3152_v10 = vld [vmem:[#allocation8 + $0x40] ss:$16 sps:$4 sm:$0xff]  }
  0xcc   :  { %2820 = vmatprep.subr.bf16.mxu0 %v3113_v58  ;;  %2895 = vmatprep.subr.bf16.mxu1 %v3489_v45 }
  0xcf   :  { %2821 = vmatpush3.bf16.msra.mxu0 %v3114_v53  ;;  %2896 = vmatpush3.bf16.msra.mxu1 %v3115_v59  ;;  %v302_v53 = vrot.slane %v281_v17, %v301_v56  ;;  %v3492_v17 = vmov 3  }
  0xd0   :  { %2822 = vmatprep.subr.bf16.mxu0 %v3116_v60  ;;  %2897 = vmatprep.subr.bf16.mxu1 %v3489_v45 }
  0xd3   :  { %2823 = vmatpush3.bf16.msra.mxu0 %v3117_v61  ;;  %2898 = vmatpush3.bf16.msra.mxu1 %v3118_v62  ;;  %v3148_v62 = vld [vmem:[#allocation8 + $0x64] ss:$16 sps:$4 sm:$0xff]  }
  0xd4   :  { %2824 = vmatprep.subr.bf16.mxu0 %v3119_v63  ;;  %2899 = vmatprep.subr.bf16.mxu1 %v3489_v45  ;;  %v3151_v63 = vld [vmem:[#allocation8 + $0x6c] ss:$16 sps:$4 sm:$0xff]  }
  0xd7   :  { %2825 = vmatpush3.bf16.msra.mxu0 %v3120_v1  ;;  %2900 = vmatpush3.bf16.msra.mxu1 %v3121_v2 }
  0xd8   :  { %1417 = vmatprep.subr.bf16.mxu0 %v3124_v12  ;;  %1458 = vmatprep.subr.bf16.mxu1 %v3127_v14  ;;  %v3157_v12 = vld [vmem:[#allocation8 + $0x4c] ss:$16 sps:$4 sm:$0xff]   ;;  %v3160_v14 = vld [vmem:[#allocation8 + $0x24] ss:$16 sps:$4 sm:$0xff]  }
  0xda   :  { %1129 = vmatmul.mubr.bf16.vlgmr.msra.gmra.mxu0 %v3606_v9  ;;  %2902 = vmatmul.mubr.bf16.vlgmr.msra.gmra.mxu1 %v3599_v38  ;;  %v3130_v9 = vld [vmem:[#allocation8 + $0xc4] ss:$16 sps:$4 sm:$0xff]   ;;  %v3133_v38 = vld [vmem:[#allocation8 + $0xcc] ss:$16 sps:$4 sm:$0xff]  }
  0xdb   :  { %1449 = vmatprep.mubr.bf16.mxu0 %v3488_v0  ;;  %1490 = vmatprep.mubr.bf16.mxu1 %v3488_v0 }
  0xdc   :  { %1418 = vmatpush1.bf16.msra.mxu0 %v3122_v11  ;;  %1459 = vmatpush1.bf16.msra.mxu1 %v3125_v13  ;;  %v3155_v11 = vld [vmem:[#allocation8 + $0x48] ss:$16 sps:$4 sm:$0xff]  }
  0xdd   :  { %1419 = vmatprep.subr.bf16.mxu0 %v3130_v9  ;;  %1460 = vmatprep.subr.bf16.mxu1 %v3133_v38  ;;  %v3163_v9 = vld [vmem:[#allocation8 + $0x2c] ss:$16 sps:$4 sm:$0xff]   ;;  %v3158_v38 = vld [vmem:[#allocation8 + $0x20] ss:$16 sps:$4 sm:$0xff]  }
  0xe0   :  { %1420 = vmatpush1.bf16.msra.mxu0 %v3128_v16  ;;  %1461 = vmatpush1.bf16.msra.mxu1 %v3131_v18  ;;  %v3161_v16 = vld [vmem:[#allocation8 + $0x28] ss:$16 sps:$4 sm:$0xff]   ;;  %v3493_v18 = vmov 1  }
  0xe1   :  { %1421 = vmatprep.subr.bf16.mxu0 %v3136_v19  ;;  %1462 = vmatprep.subr.bf16.mxu1 %v3139_v21  ;;  %v3166_v19 = vld [vmem:[#allocation8 + $0x4] ss:$16 sps:$4 sm:$0xff]   ;;  %v3169_v21 = vld [vmem:[#allocation8 + $0xc] ss:$16 sps:$4 sm:$0xff]  }
  0xe4   :  { %1422 = vmatpush1.bf16.msra.mxu0 %v3134_v23  ;;  %1463 = vmatpush1.bf16.msra.mxu1 %v3137_v24  ;;  %v3167_v23 = vld [vmem:[#allocation8 + $0x8] ss:$16 sps:$4 sm:$0xff]   ;;  %v3494_v24 = vmov 8  }
  0xe5   :  { %1423 = vmatprep.subr.bf16.mxu0 %v3142_v25  ;;  %1464 = vmatprep.subr.bf16.mxu1 %v3145_v27  ;;  %v3495_v25 = vmov 9   ;;  %v3175_v27 = vld [vmem:[#allocation10 + $0xec] ss:$16 sps:$4 sm:$0xff]  }
  0xe8   :  { %1424 = vmatpush1.bf16.msra.mxu0 %v3140_v30  ;;  %1465 = vmatpush1.bf16.msra.mxu1 %v3143_v32  ;;  %v3498_v30 = vmov 5   ;;  %v3500_v32 = vmov 6  }
  0xe9   :  { %1425 = vmatprep.subr.bf16.mxu0 %v3148_v62  ;;  %1466 = vmatprep.subr.bf16.mxu1 %v3151_v63  ;;  %v3181_v62 = vld [vmem:[#allocation10 + $0xcc] ss:$16 sps:$4 sm:$0xff]   ;;  %v3182_v63 = vld [vmem:[#allocation10 + $0xa0] ss:$16 sps:$4 sm:$0xff]  }
  0xec   :  { %1426 = vmatpush1.bf16.msra.mxu0 %v3146_v3  ;;  %v3193_v3 = vld [vmem:[#allocation10 + $0x8c] ss:$16 sps:$4 sm:$0xff]  }
 0x13a   :  { %v1007_v4 = vpop.f32.mrf.mxu1 }
 0x13c   :  { %v1009_v5 = vpop.f32.mrf.mxu1 }
 0x13e   :  { %v1011_v6 = vpop.f32.mrf.mxu1 }
 0x13f   :  { %v3154_v6 = vld [vmem:[#allocation8 + $0x44] ss:$16 sps:$4 sm:$0xff]  }
 0x140   :  { %v1012_v7 = vpop.f32.mrf.mxu1  ;;  %1427 = vmatprep.subr.bf16.mxu0 %v3154_v6  ;;  %v3196_v6 = vld [vmem:[#allocation10 + $0x64] ss:$16 sps:$4 sm:$0xff]  }
 0x141   :  { %1428 = vmatpush1.bf16.msra.mxu0 %v3152_v10  ;;  %v3197_v10 = vld [vmem:[#allocation10 + $0x68] ss:$16 sps:$4 sm:$0xff]  }
 0x142   :  { %1429 = vmatprep.subr.bf16.mxu0 %v3160_v14  ;;  %v3203_v14 = vld [vmem:[#allocation10 + $0x48] ss:$16 sps:$4 sm:$0xff]  }
 0x145   :  { %1430 = vmatpush1.bf16.msra.mxu0 %v3158_v38  ;;  %v3211_v38 = vld [vmem:[#allocation10 + $0x2c] ss:$16 sps:$4 sm:$0xff]  }
 0x146   :  { %1431 = vmatprep.subr.bf16.mxu0 %v3166_v19  ;;  %v3217_v19 = vld [vmem:[#allocation10 + $0xc] ss:$16 sps:$4 sm:$0xff]  }
 0x15a   :  { %v966_v28 = vpop.f32.mrf.mxu0 }
 0x15b   :  { %v967_v29 = vadd.f32 %v966_v28, %v286_v22  ;;  %v3164_v22 = vld [vmem:[#allocation8] ss:$16 sps:$4 sm:$0xff]   ;;  %v3496_v28 = vmov 4  }
 0x15c   :  { %v968_v31 = vpop.f32.mrf.mxu0  ;;  %1432 = vmatpush1.bf16.msra.mxu0 %v3164_v22  ;;  %v3215_v22 = vld [vmem:[#allocation10 + $0x8] ss:$16 sps:$4 sm:$0xff]  }
 0x15d   :  { %v969_v33 = vadd.f32 %v968_v31, %v290_v26  ;;  %v3627_v34 = vadd.f32 %v1007_v4, %v967_v29  ;;  %v3149_v4 = vld [vmem:[#allocation8 + $0x68] ss:$16 sps:$4 sm:$0xff]   ;;  %v3172_v26 = vld [vmem:[#allocation10 + $0xe4] ss:$16 sps:$4 sm:$0xff]   ;;  %v3497_v29 = vmov 10   ;;  %v3499_v31 = vmov 13  }
 0x15e   :  { %v970_v35 = vpop.f32.mrf.mxu0  ;;  %1467 = vmatpush1.bf16.msra.mxu1 %v3149_v4  ;;  %1739 = vmatprep.subr.bf16.mxu0 %v3172_v26  ;;  %v3188_v4 = vld [vmem:[#allocation10 + $0x80] ss:$16 sps:$4 sm:$0xff]   ;;  %v3223_v26 = vld [vmem:[#allocation11 + $0xec] ss:$16 sps:$4 sm:$0xff]  }
 0x15f   :  { %v3629_v36 = vadd.f32 %v1009_v5, %v969_v33  ;;  %1468 = vmatprep.subr.bf16.mxu1 %v3157_v12  ;;  %v3501_v33 = vmov 14   ;;  %v3502_v35 = vmov 12   ;;  %v3205_v12 = vld [vmem:[#allocation10 + $0x4c] ss:$16 sps:$4 sm:$0xff]  }
 0x160   :  { %v971_v37 = vpop.f32.mrf.mxu0 }
 0x161   :  { %v3503_v37 = vmov 15  }
 0x162   :  { %1469 = vmatpush1.bf16.msra.mxu1 %v3155_v11  ;;  %v3202_v11 = vld [vmem:[#allocation10 + $0x44] ss:$16 sps:$4 sm:$0xff]  }
 0x163   :  { %1470 = vmatprep.subr.bf16.mxu1 %v3163_v9  ;;  %v3208_v9 = vld [vmem:[#allocation10 + $0x24] ss:$16 sps:$4 sm:$0xff]  }
 0x166   :  { %1471 = vmatpush1.bf16.msra.mxu1 %v3161_v16  ;;  %v3206_v16 = vld [vmem:[#allocation10 + $0x20] ss:$16 sps:$4 sm:$0xff]  }
 0x167   :  { %1472 = vmatprep.subr.bf16.mxu1 %v3169_v21  ;;  %v3212_v21 = vld [vmem:[#allocation10] ss:$16 sps:$4 sm:$0xff]  }
 0x16a   :  { %1473 = vmatpush1.bf16.msra.mxu1 %v3167_v23  ;;  %v3303_v23 = vld [vmem:[#allocation2 + $0x8] sm:$0xff] }
 0x16b   :  { %1780 = vmatprep.subr.bf16.mxu1 %v3175_v27  ;;  %v3218_v27 = vld [vmem:[#allocation11 + $0xe0] ss:$16 sps:$4 sm:$0xff]  }
 0x17a   :  { %v1048_v43 = vpop.f32.mrf.mxu1  ;;  %v1089_v44 = vpop.f32.mrf.mxu0 }
 0x17b   :  { %v1049_v45 = vadd.f32 %v1048_v43, %v294_v41  ;;  %v3504_v41 = vmov 11  }
 0x17c   :  { %v1050_v46 = vpop.f32.mrf.mxu1  ;;  %v1091_v47 = vpop.f32.mrf.mxu0 }
 0x17d   :  { %v3639_v48 = vadd.f32 %v1089_v44, %v1049_v45  ;;  %v1051_v49 = vadd.f32 %v1050_v46, %v298_v42  ;;  %v3505_v42 = vmov 7  }
 0x17e   :  { %v1093_v50 = vpop.f32.mrf.mxu0  ;;  %v1052_v51 = vpop.f32.mrf.mxu1 }
 0x17f   :  { %v3641_v52 = vadd.f32 %v1091_v47, %v1051_v49 }
 0x180   :  { %v1094_v54 = vpop.f32.mrf.mxu0  ;;  %v1053_v55 = vpop.f32.mrf.mxu1 }
 0x19a   :  { %v2826_v57 = vpop.f32.mrf.mxu0  ;;  %v1170_v58 = vpop.f32.mrf.mxu1 }
 0x19c   :  { %v2827_v59 = vpop.f32.mrf.mxu0  ;;  %v2903_v60 = vpop.f32.mrf.mxu1 }
 0x19d   :  { %v2828_v61 = vadd.f32 %v2827_v59, %v2826_v57  ;;  %v3302_v57 = vld [vmem:[#allocation2] sm:$0xff] }
 0x19e   :  { %v2829_v1 = vpop.f32.mrf.mxu0  ;;  %v1173_v2 = vpop.f32.mrf.mxu1  ;;  %v3173_v59 = vld [vmem:[#allocation10 + $0xe8] ss:$16 sps:$4 sm:$0xff]  }
 0x19f   :  { %v1131_v5 = vadd.f32 %v2828_v61, %v302_v53  ;;  %v3170_v53 = vld [vmem:[#allocation10 + $0xe0] ss:$16 sps:$4 sm:$0xff]   ;;  %v3178_v61 = vld [vmem:[#allocation10 + $0xc4] ss:$16 sps:$4 sm:$0xff]   ;;  %v3185_v1 = vld [vmem:[#allocation10 + $0xa8] ss:$16 sps:$4 sm:$0xff]  }
 0x1a0   :  { %v2830_v7 = vpop.f32.mrf.mxu0  ;;  %v2904_v8 = vpop.f32.mrf.mxu1  ;;  %v3190_v2 = vld [vmem:[#allocation10 + $0x84] ss:$16 sps:$4 sm:$0xff]  }
 0x1a1   :  { %v3644_v13 = vadd.f32 %v1170_v58, %v1131_v5  ;;  %v3191_v5 = vld [vmem:[#allocation10 + $0x88] ss:$16 sps:$4 sm:$0xff]   ;;  %v3199_v7 = vld [vmem:[#allocation10 + $0x6c] ss:$16 sps:$4 sm:$0xff]   ;;  %v3194_v8 = vld [vmem:[#allocation10 + $0x60] ss:$16 sps:$4 sm:$0xff]  }
 0x1a3   :  { %1190 = vperm.xlu1 %2939, %v3644_v13   ;;  %1178 = vperm.xlu0 %2937, %v3644_v13  }
 0x1a7   :  { %2940 = vset.pattern.permute.xlu1 %v3492_v17  ;;  %2938 = vset.pattern.permute.xlu0 %v3493_v18  ;;  %v3209_v17 = vld [vmem:[#allocation10 + $0x28] ss:$16 sps:$4 sm:$0xff]   ;;  %v3214_v18 = vld [vmem:[#allocation10 + $0x4] ss:$16 sps:$4 sm:$0xff]  }
 0x1a8   :  { %1196 = vperm.xlu1 %2940, %v3644_v13   ;;  %1184 = vperm.xlu0 %2938, %v3644_v13  }
 0x1ac   :  { %2941 = vset.pattern.permute.xlu1 %v3494_v24  ;;  %2942 = vset.pattern.permute.xlu0 %v3495_v25  ;;  %v3220_v25 = vld [vmem:[#allocation11 + $0xe4] ss:$16 sps:$4 sm:$0xff]  }
 0x1ad   :  { %1822 = vperm.xlu1 %2941, %v3644_v13   ;;  %1828 = vperm.xlu0 %2942, %v3644_v13  }
 0x1b1   :  { %2943 = vset.pattern.permute.xlu1 %v3496_v28  ;;  %2945 = vset.pattern.permute.xlu0 %v3497_v29  ;;  %v3221_v28 = vld [vmem:[#allocation11 + $0xe8] ss:$16 sps:$4 sm:$0xff]  }
 0x1b2   :  { %1500 = vperm.xlu1 %2943, %v3644_v13   ;;  %1834 = vperm.xlu0 %2945, %v3644_v13  }
 0x1b6   :  { %2944 = vset.pattern.permute.xlu1 %v3498_v30  ;;  %2948 = vset.pattern.permute.xlu0 %v3499_v31  ;;  %v3226_v30 = vld [vmem:[#allocation11 + $0xc4] ss:$16 sps:$4 sm:$0xff]   ;;  %v3229_v31 = vld [vmem:[#allocation11 + $0xcc] ss:$16 sps:$4 sm:$0xff]  }
 0x1b7   :  { %1506 = vperm.xlu1 %2944, %v3644_v13   ;;  %2150 = vperm.xlu0 %2948, %v3644_v13  }
 0x1bb   :  { %2946 = vset.pattern.permute.xlu1 %v3500_v32  ;;  %2951 = vset.pattern.permute.xlu0 %v3501_v33  ;;  %v3224_v32 = vld [vmem:[#allocation11 + $0xc0] ss:$16 sps:$4 sm:$0xff]   ;;  %v3227_v33 = vld [vmem:[#allocation11 + $0xc8] ss:$16 sps:$4 sm:$0xff]  }
 0x1bc   :  { %1512 = vperm.xlu1 %2946, %v3644_v13   ;;  %2156 = vperm.xlu0 %2951, %v3644_v13  }
 0x1c0   :  { %2947 = vset.pattern.permute.xlu1 %v3502_v35  ;;  %2953 = vset.pattern.permute.xlu0 %v3503_v37  ;;  %v3232_v35 = vld [vmem:[#allocation11 + $0xa4] ss:$16 sps:$4 sm:$0xff]  }
 0x1c1   :  { %2144 = vperm.xlu1 %2947, %v3644_v13  }
 0x1c5   :  { %2949 = vset.pattern.permute.xlu1 %v3504_v41  ;;  %v3230_v41 = vld [vmem:[#allocation11 + $0xa0] ss:$16 sps:$4 sm:$0xff]  }
 0x1c6   :  { %1840 = vperm.xlu1 %2949, %v3644_v13  }
 0x1ca   :  { %2950 = vset.pattern.permute.xlu1 %v3505_v42  ;;  %v3233_v42 = vld [vmem:[#allocation11 + $0xa8] ss:$16 sps:$4 sm:$0xff]  }
 0x1cb   :  { %1518 = vperm.xlu1 %2950, %v3644_v13  }
 0x1cf   :  { %2952 = vset.pattern.permute.xlu1 %v3503_v37  ;;  %v3235_v37 = vld [vmem:[#allocation11 + $0xac] ss:$16 sps:$4 sm:$0xff]  }
 0x1d0   :  { %2162 = vperm.xlu1 %2952, %v3644_v13   ;;  %v3200_v13 = vld [vmem:[#allocation10 + $0x40] ss:$16 sps:$4 sm:$0xff]  }
 0x21e   :  { %v1179_v43 = vpop.permute.xlu0 %1178  ;;  %v1191_v44 = vpop.permute.xlu1 %1190 }
 0x21f   :  { %v1181_v46 = vmul.f32 %v1179_v43, %v3627_v34  ;;  %v1193_v50 = vmul.f32 %v1191_v44, %v3639_v48  ;;  %v3176_v34 = vld [vmem:[#allocation10 + $0xc0] ss:$16 sps:$4 sm:$0xff]   ;;  %v3184_v48 = vld [vmem:[#allocation10 + $0xa4] ss:$16 sps:$4 sm:$0xff]   ;;  %v3241_v44 = vld [vmem:[#allocation11 + $0x8c] ss:$16 sps:$4 sm:$0xff]  }
 0x220   :  { %v3238_v43 = vld [vmem:[#allocation11 + $0x84] ss:$16 sps:$4 sm:$0xff]  }
 0x223   :  { %v1185_v45 = vpop.permute.xlu0 %1184  ;;  %v1197_v49 = vpop.permute.xlu1 %1196 }
 0x224   :  { %v1187_v47 = vmul.f32 %v1185_v45, %v3629_v36  ;;  %v1199_v54 = vmul.f32 %v1197_v49, %v3641_v52  ;;  %v3179_v36 = vld [vmem:[#allocation10 + $0xc8] ss:$16 sps:$4 sm:$0xff]   ;;  %v3187_v52 = vld [vmem:[#allocation10 + $0xac] ss:$16 sps:$4 sm:$0xff]   ;;  %v3236_v45 = vld [vmem:[#allocation11 + $0x80] ss:$16 sps:$4 sm:$0xff]  }
 0x225   :  { %v3247_v49 = vld [vmem:[#allocation11 + $0x6c] ss:$16 sps:$4 sm:$0xff]  }
 0x226   :  { %v1188_v51 = vadd.f32 %v1187_v47, %v1181_v46  ;;  %v3239_v46 = vld [vmem:[#allocation11 + $0x88] ss:$16 sps:$4 sm:$0xff]   ;;  %v3244_v47 = vld [vmem:[#allocation11 + $0x64] ss:$16 sps:$4 sm:$0xff]  }
 0x228   :  { %v1194_v55 = vadd.f32 %v1193_v50, %v1188_v51  ;;  %v3242_v50 = vld [vmem:[#allocation11 + $0x60] ss:$16 sps:$4 sm:$0xff]   ;;  %v3250_v51 = vld [vmem:[#allocation11 + $0x44] ss:$16 sps:$4 sm:$0xff]  }
 0x22a   :  { %v3666_v56 = vadd.f32 %v1199_v54, %v1194_v55  ;;  %v3253_v54 = vld [vmem:[#allocation11 + $0x4c] ss:$16 sps:$4 sm:$0xff]   ;;  %v3248_v55 = vld [vmem:[#allocation11 + $0x40] ss:$16 sps:$4 sm:$0xff]  }
 0x22c   :  { %v1201_v58 = vadd.f32 %v3302_v57, %v3666_v56  ;;  %v1523_v24 = vadd.f32 %v3303_v23, %v3666_v56  ;;  %v3251_v57 = vld [vmem:[#allocation11 + $0x48] ss:$16 sps:$4 sm:$0xff]  }
 0x22d   :  { %v3286_v23 = vld [vmem:[#allocation13 + $0xe8] sm:$0xff]  }
 0x22e   :  { %v1202_v60 = vpack.c.bf16 %v1201_v58, %v1201_v58  ;;  %v1524_v29 = vpack.c.bf16 %v1523_v24, %v1523_v24  ;;  %v3256_v58 = vld [vmem:[#allocation11 + $0x24] ss:$16 sps:$4 sm:$0xff]   ;;  %v3287_v24 = vld [vmem:[#allocation13 + $0xa8] sm:$0xff]  }
 0x230   :  { %1450 = vmatmul.mubr.bf16.vlgmr.msra.gmra.mxu0 %v1202_v60  ;;  %1491 = vmatmul.mubr.bf16.vlgmr.msra.gmra.mxu1 %v1202_v60  ;;  %v3257_v60 = vld [vmem:[#allocation11 + $0x28] ss:$16 sps:$4 sm:$0xff]  }
 0x231   :  { %1740 = vmatpush1.bf16.msra.mxu0 %v3170_v53  ;;  %1781 = vmatpush1.bf16.msra.mxu1 %v3173_v59  ;;  %v3259_v53 = vld [vmem:[#allocation11 + $0x2c] ss:$16 sps:$4 sm:$0xff]   ;;  %v3254_v59 = vld [vmem:[#allocation11 + $0x20] ss:$16 sps:$4 sm:$0xff]  }
 0x232   :  { %1741 = vmatprep.subr.bf16.mxu0 %v3178_v61  ;;  %1782 = vmatprep.subr.bf16.mxu1 %v3181_v62  ;;  %v3262_v61 = vld [vmem:[#allocation11 + $0x4] ss:$16 sps:$4 sm:$0xff]   ;;  %v3265_v62 = vld [vmem:[#allocation11 + $0xc] ss:$16 sps:$4 sm:$0xff]  }
 0x233   :  { %1771 = vmatprep.mubr.bf16.mxu0 %v3488_v0  ;;  %1812 = vmatprep.mubr.bf16.mxu1 %v3488_v0 }
 0x235   :  { %1742 = vmatpush1.bf16.msra.mxu0 %v3176_v34  ;;  %1783 = vmatpush1.bf16.msra.mxu1 %v3179_v36  ;;  %v3260_v34 = vld [vmem:[#allocation11] ss:$16 sps:$4 sm:$0xff]   ;;  %v3263_v36 = vld [vmem:[#allocation11 + $0x8] ss:$16 sps:$4 sm:$0xff]  }
 0x236   :  { %1743 = vmatprep.subr.bf16.mxu0 %v3184_v48  ;;  %1784 = vmatprep.subr.bf16.mxu1 %v3187_v52  ;;  %v3304_v48 = vld [vmem:[#allocation2 + $0x10] sm:$0xff] }
 0x237   :  { %v1845_v52 = vadd.f32 %v3304_v48, %v3666_v56 }
 0x239   :  { %1744 = vmatpush1.bf16.msra.mxu0 %v3182_v63  ;;  %1785 = vmatpush1.bf16.msra.mxu1 %v3185_v1  ;;  %v1846_v63 = vpack.c.bf16 %v1845_v52, %v1845_v52  ;;  %v2170_v1 = vpack.c.bf16 %v3666_v56, %v3666_v56 }
 0x23a   :  { %1745 = vmatprep.subr.bf16.mxu0 %v3190_v2  ;;  %1786 = vmatprep.subr.bf16.mxu1 %v3193_v3  ;;  %v3266_v2 = vld [vmem:[#allocation13 + $0x78] sm:$0xff]  }
 0x23b   :  { %v3267_v3 = vld [vmem:[#allocation13 + $0x38] sm:$0xff]  }
 0x23d   :  { %1746 = vmatpush1.bf16.msra.mxu0 %v3188_v4  ;;  %1787 = vmatpush1.bf16.msra.mxu1 %v3191_v5  ;;  %v3268_v4 = vld [vmem:[#allocation13 + $0x70] sm:$0xff]  }
 0x23e   :  { %1747 = vmatprep.subr.bf16.mxu0 %v3196_v6  ;;  %1788 = vmatprep.subr.bf16.mxu1 %v3199_v7  ;;  %v3269_v5 = vld [vmem:[#allocation13 + $0x30] sm:$0xff]   ;;  %v3270_v6 = vld [vmem:[#allocation13 + $0x68] sm:$0xff]  }
 0x23f   :  { %v3271_v7 = vld [vmem:[#allocation13 + $0x28] sm:$0xff]  }
 0x241   :  { %1748 = vmatpush1.bf16.msra.mxu0 %v3194_v8  ;;  %1789 = vmatpush1.bf16.msra.mxu1 %v3197_v10  ;;  %v3272_v8 = vld [vmem:[#allocation13 + $0x60] sm:$0xff]  }
 0x242   :  { %1749 = vmatprep.subr.bf16.mxu0 %v3202_v11  ;;  %1790 = vmatprep.subr.bf16.mxu1 %v3205_v12  ;;  %v3273_v10 = vld [vmem:[#allocation13 + $0x20] sm:$0xff]   ;;  %v3274_v11 = vld [vmem:[#allocation13 + $0x58] sm:$0xff]  }
 0x243   :  { %v3275_v12 = vld [vmem:[#allocation13 + $0x18] sm:$0xff]  }
 0x245   :  { %1750 = vmatpush1.bf16.msra.mxu0 %v3200_v13  ;;  %1791 = vmatpush1.bf16.msra.mxu1 %v3203_v14  ;;  %v3276_v13 = vld [vmem:[#allocation13 + $0x50] sm:$0xff]  }
 0x246   :  { %1751 = vmatprep.subr.bf16.mxu0 %v3208_v9  ;;  %1792 = vmatprep.subr.bf16.mxu1 %v3211_v38  ;;  %v3277_v14 = vld [vmem:[#allocation13 + $0x10] sm:$0xff]   ;;  %v3278_v9 = vld [vmem:[#allocation13 + $0x48] sm:$0xff]  }
 0x247   :  { %v3279_v38 = vld [vmem:[#allocation13 + $0x8] sm:$0xff]  }
 0x249   :  { %1752 = vmatpush1.bf16.msra.mxu0 %v3206_v16  ;;  %1793 = vmatpush1.bf16.msra.mxu1 %v3209_v17  ;;  %v3280_v16 = vld [vmem:[#allocation13 + $0x40] sm:$0xff]  }
 0x24a   :  { %1753 = vmatprep.subr.bf16.mxu0 %v3214_v18  ;;  %1794 = vmatprep.subr.bf16.mxu1 %v3217_v19  ;;  %v3281_v17 = vld [vmem:[#allocation13] sm:$0xff]   ;;  %v3282_v18 = vld [vmem:[#allocation13 + $0xf8] sm:$0xff]  }
 0x24b   :  { %v3283_v19 = vld [vmem:[#allocation13 + $0xb8] sm:$0xff]  }
 0x24d   :  { %1754 = vmatpush1.bf16.msra.mxu0 %v3212_v21  ;;  %1795 = vmatpush1.bf16.msra.mxu1 %v3215_v22  ;;  %v3284_v21 = vld [vmem:[#allocation13 + $0xf0] sm:$0xff]  }
 0x24e   :  { %2061 = vmatprep.subr.bf16.mxu0 %v3220_v25  ;;  %2102 = vmatprep.subr.bf16.mxu1 %v3223_v26  ;;  %v3285_v22 = vld [vmem:[#allocation13 + $0xb0] sm:$0xff]   ;;  %v3288_v25 = vld [vmem:[#allocation13 + $0xe0] sm:$0xff]  }
 0x24f   :  { %v3289_v26 = vld [vmem:[#allocation13 + $0xa0] sm:$0xff]  }
 0x250   :  { %1772 = vmatmul.mubr.bf16.vlgmr.msra.gmra.mxu0 %v1524_v29  ;;  %1813 = vmatmul.mubr.bf16.vlgmr.msra.gmra.mxu1 %v1524_v29  ;;  %v3292_v29 = vld [vmem:[#allocation13 + $0xd0] sm:$0xff]  }
 0x251   :  { %2062 = vmatpush1.bf16.msra.mxu0 %v3218_v27  ;;  %2103 = vmatpush1.bf16.msra.mxu1 %v3221_v28  ;;  %v3290_v27 = vld [vmem:[#allocation13 + $0xd8] sm:$0xff]  }
 0x252   :  { %2063 = vmatprep.subr.bf16.mxu0 %v3226_v30  ;;  %2104 = vmatprep.subr.bf16.mxu1 %v3229_v31  ;;  %v3291_v28 = vld [vmem:[#allocation13 + $0x98] sm:$0xff]   ;;  %v3293_v30 = vld [vmem:[#allocation13 + $0x90] sm:$0xff]   ;;  %v3294_v31 = vld [vmem:[#allocation13 + $0xc8] sm:$0xff]  }
 0x253   :  { %2093 = vmatprep.mubr.bf16.mxu0 %v3488_v0  ;;  %2134 = vmatprep.mubr.bf16.mxu1 %v3488_v0  ;;  %v3245_v0 = vld [vmem:[#allocation11 + $0x68] ss:$16 sps:$4 sm:$0xff]  }
 0x255   :  { %2064 = vmatpush1.bf16.msra.mxu0 %v3224_v32  ;;  %2105 = vmatpush1.bf16.msra.mxu1 %v3227_v33  ;;  %v3295_v32 = vld [vmem:[#allocation13 + $0x88] sm:$0xff]   ;;  %v3296_v33 = vld [vmem:[#allocation13 + $0xc0] sm:$0xff]  }
 0x256   :  { %2065 = vmatprep.subr.bf16.mxu0 %v3232_v35  ;;  %2106 = vmatprep.subr.bf16.mxu1 %v3235_v37  ;;  %v3297_v35 = vld [vmem:[#allocation13 + $0x80] sm:$0xff]  }
 0x259   :  { %2066 = vmatpush1.bf16.msra.mxu0 %v3230_v41  ;;  %2107 = vmatpush1.bf16.msra.mxu1 %v3233_v42 }
 0x25a   :  { %2067 = vmatprep.subr.bf16.mxu0 %v3238_v43  ;;  %2108 = vmatprep.subr.bf16.mxu1 %v3241_v44  ;;  %v1823_v44 = vpop.permute.xlu1 %1822 }
 0x25d   :  { %2068 = vmatpush1.bf16.msra.mxu0 %v3236_v45  ;;  %2109 = vmatpush1.bf16.msra.mxu1 %v3239_v46 }
 0x25e   :  { %2069 = vmatprep.subr.bf16.mxu0 %v3244_v47  ;;  %2110 = vmatprep.subr.bf16.mxu1 %v3247_v49 }
 0x261   :  { %2070 = vmatpush1.bf16.msra.mxu0 %v3242_v50  ;;  %2111 = vmatpush1.bf16.msra.mxu1 %v3245_v0  ;;  %v1501_v50 = vpop.permute.xlu1 %1500 }
 0x262   :  { %2071 = vmatprep.subr.bf16.mxu0 %v3250_v51  ;;  %2112 = vmatprep.subr.bf16.mxu1 %v3253_v54  ;;  %v1235_v54 = vld [vmem:[%s3709_s4] sm:$0xf] }
 0x265   :  { %2072 = vmatpush1.bf16.msra.mxu0 %v3248_v55  ;;  %2113 = vmatpush1.bf16.msra.mxu1 %v3251_v57  ;;  %v1507_v0 = vpop.permute.xlu1 %1506  ;;  %v1244_v55 = vrot.slane %v1235_v54, %v3623_v20  ;;  %v1240_v57 = vrot.slane %v1235_v54, %v3620_v15 }
 0x266   :  { %2073 = vmatprep.subr.bf16.mxu0 %v3256_v58  ;;  %2114 = vmatprep.subr.bf16.mxu1 %v3259_v53  ;;  %v1557_v53 = vld [vmem:[%s3711_s6] sm:$0xf] }
 0x267   :  { %v1570_v48 = vrot.slane %v1557_v53, %v3632_v39  ;;  %v1566_v52 = vrot.slane %v1557_v53, %v3623_v20 }
 0x269   :  { %2074 = vmatpush1.bf16.msra.mxu0 %v3254_v59  ;;  %2115 = vmatpush1.bf16.msra.mxu1 %v3257_v60  ;;  %v1513_v51 = vpop.permute.xlu1 %1512 }
 0x26a   :  { %2075 = vmatprep.subr.bf16.mxu0 %v3262_v61  ;;  %2116 = vmatprep.subr.bf16.mxu1 %v3265_v62  ;;  %v1248_v61 = vrot.slane %v1235_v54, %v3632_v39  ;;  %v1562_v62 = vrot.slane %v1557_v53, %v3620_v15 }
 0x26d   :  { %2076 = vmatpush1.bf16.msra.mxu0 %v3260_v34  ;;  %2117 = vmatpush1.bf16.msra.mxu1 %v3263_v36  ;;  %v2145_v59 = vpop.permute.xlu1 %2144  ;;  %v1829_v36 = vpop.permute.xlu0 %1828 }
 0x26e   :  { %2841 = vmatprep.subr.bf16.mxu0 %v3266_v2  ;;  %2863 = vmatprep.subr.bf16.mxu1 %v3282_v18  ;;  %v1252_v2 = vrot.slane %v1235_v54, %v3635_v40 }
 0x270   :  { %2094 = vmatmul.mubr.bf16.vlgmr.msra.gmra.mxu0 %v1846_v63  ;;  %2135 = vmatmul.mubr.bf16.vlgmr.msra.gmra.mxu1 %v1846_v63 }
 0x271   :  { %2506 = vmatprep.mubr.bf16.mxu1 %v2170_v1  ;;  %2842 = vmatpush3.bf16.msra.mxu0 %v3267_v3 }
 0x272   :  { %2843 = vmatprep.subr.bf16.mxu0 %v3268_v4  ;;  %2864 = vmatpush3.bf16.msra.mxu1 %v3283_v19 }
 0x273   :  { %2865 = vmatprep.subr.bf16.mxu1 %v3284_v21 }
 0x275   :  { %2844 = vmatpush3.bf16.msra.mxu0 %v3269_v5  ;;  %v1841_v5 = vpop.permute.xlu1 %1840 }
 0x276   :  { %2845 = vmatprep.subr.bf16.mxu0 %v3270_v6  ;;  %2866 = vmatpush3.bf16.msra.mxu1 %v3285_v22 }
 0x277   :  { %2867 = vmatprep.subr.bf16.mxu1 %v3286_v23 }
 0x279   :  { %2846 = vmatpush3.bf16.msra.mxu0 %v3271_v7  ;;  %v1574_v7 = vrot.slane %v1557_v53, %v3635_v40 }
 0x27a   :  { %2847 = vmatprep.subr.bf16.mxu0 %v3272_v8  ;;  %2868 = vmatpush3.bf16.msra.mxu1 %v3287_v24 }
 0x27b   :  { %2869 = vmatprep.subr.bf16.mxu1 %v3288_v25  ;;  %v1519_v25 = vpop.permute.xlu1 %1518 }
 0x27d   :  { %2848 = vmatpush3.bf16.msra.mxu0 %v3273_v10 }
 0x27e   :  { %2849 = vmatprep.subr.bf16.mxu0 %v3274_v11  ;;  %2870 = vmatpush3.bf16.msra.mxu1 %v3289_v26 }
 0x27f   :  { %2871 = vmatprep.subr.bf16.mxu1 %v3290_v27 }
 0x281   :  { %2850 = vmatpush3.bf16.msra.mxu0 %v3275_v12 }
 0x282   :  { %2851 = vmatprep.subr.bf16.mxu0 %v3276_v13  ;;  %2872 = vmatpush3.bf16.msra.mxu1 %v3291_v28 }
 0x283   :  { %2873 = vmatprep.subr.bf16.mxu1 %v3292_v29 }
 0x285   :  { %2852 = vmatpush3.bf16.msra.mxu0 %v3277_v14 }
 0x286   :  { %2853 = vmatprep.subr.bf16.mxu0 %v3278_v9  ;;  %2874 = vmatpush3.bf16.msra.mxu1 %v3293_v30 }
 0x287   :  { %2875 = vmatprep.subr.bf16.mxu1 %v3294_v31 }
 0x289   :  { %2854 = vmatpush3.bf16.msra.mxu0 %v3279_v38 }
 0x28a   :  { %2855 = vmatprep.subr.bf16.mxu0 %v3280_v16  ;;  %2876 = vmatpush3.bf16.msra.mxu1 %v3295_v32 }
 0x28b   :  { %2877 = vmatprep.subr.bf16.mxu1 %v3296_v33 }
 0x28d   :  { %2856 = vmatpush3.bf16.msra.mxu0 %v3281_v17  ;;  %v1835_v17 = vpop.permute.xlu0 %1834 }
 0x28e   :  { %2878 = vmatpush3.bf16.msra.mxu1 %v3297_v35 }
 0x2f0   :  { %v1451_v37 = vpop.f32.mrf.mxu0  ;;  %v1492_v41 = vpop.f32.mrf.mxu1 }
 0x2f1   :  { %v1452_v60 = vadd.f32 %v1451_v37, %v1240_v57  ;;  %v1493_v1 = vadd.f32 %v1492_v41, %v1248_v61  ;;  %v1879_v37 = vld [vmem:[%s3713_s8] sm:$0xf] }
 0x2f2   :  { %v1453_v42 = vpop.f32.mrf.mxu0  ;;  %v1494_v43 = vpop.f32.mrf.mxu1  ;;  %v1884_v41 = vrot.slane %v1879_v37, %v3620_v15 }
 0x2f3   :  { %v1454_v58 = vadd.f32 %v1453_v42, %v1244_v55  ;;  %v1503_v63 = vmul.f32 %v1501_v50, %v1452_v60  ;;  %v1515_v14 = vmul.f32 %v1513_v51, %v1493_v1  ;;  %v1495_v9 = vadd.f32 %v1494_v43, %v1252_v2  ;;  %v2151_v42 = vpop.permute.xlu0 %2150 }
 0x2f4   :  { %v1455_v45 = vpop.f32.mrf.mxu0  ;;  %v1496_v46 = vpop.f32.mrf.mxu1  ;;  %v1892_v43 = vrot.slane %v1879_v37, %v3632_v39 }
 0x2f5   :  { %v1509_v34 = vmul.f32 %v1507_v0, %v1454_v58  ;;  %v1521_v28 = vmul.f32 %v1519_v25, %v1495_v9 }
 0x2f6   :  { %v1456_v47 = vpop.f32.mrf.mxu0  ;;  %v1497_v49 = vpop.f32.mrf.mxu1 }
 0x2f7   :  { %v1510_v8 = vadd.f32 %v1509_v34, %v1503_v63  ;;  %v1896_v49 = vrot.slane %v1879_v37, %v3635_v40  ;;  %v2157_v58 = vpop.permute.xlu0 %2156 }
 0x2f9   :  { %v1516_v22 = vadd.f32 %v1515_v14, %v1510_v8 }
 0x2fb   :  { %v1522_v31 = vadd.f32 %v1521_v28, %v1516_v22 }
 0x2fd   :  { %v2167_v35 = vpack.c.bf16 %v1522_v31, %v1522_v31 }
 0x310   :  { %v1773_v3 = vpop.f32.mrf.mxu0  ;;  %v1814_v4 = vpop.f32.mrf.mxu1 }
 0x311   :  { %v1774_v6 = vadd.f32 %v1773_v3, %v1562_v62  ;;  %v1815_v12 = vadd.f32 %v1814_v4, %v1570_v48 }
 0x312   :  { %v1775_v10 = vpop.f32.mrf.mxu0  ;;  %v1816_v11 = vpop.f32.mrf.mxu1 }
 0x313   :  { %v1776_v13 = vadd.f32 %v1775_v10, %v1566_v52  ;;  %v1825_v18 = vmul.f32 %v1823_v44, %v1774_v6  ;;  %v1817_v21 = vadd.f32 %v1816_v11, %v1574_v7  ;;  %v1837_v26 = vmul.f32 %v1835_v17, %v1815_v12 }
 0x314   :  { %v1777_v38 = vpop.f32.mrf.mxu0  ;;  %v1818_v16 = vpop.f32.mrf.mxu1  ;;  %v1888_v44 = vrot.slane %v1879_v37, %v3623_v20 }
 0x315   :  { %v1831_v19 = vmul.f32 %v1829_v36, %v1776_v13  ;;  %v1843_v30 = vmul.f32 %v1841_v5, %v1817_v21  ;;  %v2163_v20 = vpop.permute.xlu1 %2162 }
 0x316   :  { %v1778_v23 = vpop.f32.mrf.mxu0  ;;  %v1819_v24 = vpop.f32.mrf.mxu1 }
 0x317   :  { %v1832_v27 = vadd.f32 %v1831_v19, %v1825_v18 }
 0x319   :  { %v1838_v29 = vadd.f32 %v1837_v26, %v1832_v27 }
 0x31b   :  { %v1844_v32 = vadd.f32 %v1843_v30, %v1838_v29 }
 0x31d   :  { %v2168_v33 = vpack.c.bf16 %v1844_v32, %v1844_v32 }
 0x31f   :  { %2466 = vmatprep.mubr.bf16.mxu0 %v2168_v33 }
 0x320   :  { %2467 = vmatmul.mubr.bf16.vlgmr.msra.gmra.mxu0 %v2167_v35 }
 0x330   :  { %v2095_v45 = vpop.f32.mrf.mxu0  ;;  %v2136_v46 = vpop.f32.mrf.mxu1 }
 0x331   :  { %v2096_v47 = vadd.f32 %v2095_v45, %v1884_v41  ;;  %v2137_v51 = vadd.f32 %v2136_v46, %v1892_v43 }
 0x332   :  { %v2097_v50 = vpop.f32.mrf.mxu0  ;;  %v2138_v0 = vpop.f32.mrf.mxu1 }
 0x333   :  { %v2098_v54 = vadd.f32 %v2097_v50, %v1888_v44  ;;  %v2147_v53 = vmul.f32 %v2145_v59, %v2096_v47  ;;  %v2139_v15 = vadd.f32 %v2138_v0, %v1896_v49  ;;  %v2159_v39 = vmul.f32 %v2157_v58, %v2137_v51  ;;  %v2777_v59 = vld [vmem:[%s3715_s10] ss:$0 sm:$0xff]  ;;  %s3506_s10 = smov [#allocation14]  }
 0x334   :  { %v2099_v55 = vpop.f32.mrf.mxu0  ;;  %v2140_v57 = vpop.f32.mrf.mxu1  ;;  %s2549_s3 = sshll.u32 %s3506_s10, 4  ;;  %s2550_s3 = int_to_ptr.vmem [resolvable:$true] %s2549_s3 }
 0x335   :  { %v2153_v60 = vmul.f32 %v2151_v42, %v2098_v54  ;;  %v2165_v48 = vmul.f32 %v2163_v20, %v2139_v15  ;;  %s3445_s18 = scalar_lea.vmem %s2550_s3, 32  ;;  %p3450_p8 = scmp.lt.s32.totalorder %s2550_s3, %s2550_s3 }
 0x336   :  { %v2100_v61 = vpop.f32.mrf.mxu0  ;;  %v2141_v62 = vpop.f32.mrf.mxu1  ;;  %p3446_p7 = scmp.ne.s32.totalorder %s2550_s3, %s3445_s18  ;;  %p3451_p9 = scmp.lt.s32.totalorder %s3445_s18, %s3445_s18 }
 0x337   :  { %v2154_v34 = vadd.f32 %v2153_v60, %v2147_v53 }
 0x338   :  { %p3452_p10 = por %p3451_p9, %p3450_p8 }
 0x339   :  { %v2160_v36 = vadd.f32 %v2159_v39, %v2154_v34 }
 0x33a   :  { %p3453_p11 = pnand %p3452_p10, %p3446_p7 }
 0x33b   :  { %v2166_v52 = vadd.f32 %v2165_v48, %v2160_v36 }
 0x33d   :  { %v2169_v63 = vpack.c.bf16 %v2166_v52, %v2166_v52 }
 0x33f   :  { %2507 = vmatmul.mubr.bf16.vlgmr.msra.gmra.mxu1 %v2169_v63 }
 0x3e0   :  { %v2857_v40 = vpop.f32.mrf.mxu0 }
 0x3e2   :  { %v2858_v1 = vpop.f32.mrf.mxu0 }
 0x3e3   :  { %v2859_v4 = vadd.f32 %v2858_v1, %v2857_v40 }
 0x3e4   :  { %v2860_v2 = vpop.f32.mrf.mxu0 }
 0x3e5   :  { %v2469_v7 = vadd.f32 %v2859_v4, %v2777_v59 }
 0x3e6   :  { %v2861_v3 = vpop.f32.mrf.mxu0 }
 0x3ff   :  { %v2879_v5 = vpop.f32.mrf.mxu1 }
 0x401   :  { %v2880_v6 = vpop.f32.mrf.mxu1 }
 0x402   :  { %v2881_v8 = vadd.f32 %v2880_v6, %v2879_v5 }
 0x403   :  { %v2882_v10 = vpop.f32.mrf.mxu1 }
 0x404   :  { %v2509_v11 = vadd.f32 %v2881_v8, %v2469_v7 }
 0x405   :  { %v2883_v12 = vpop.f32.mrf.mxu1 }
 0x406   :  { %2514 = vmax.xlane.f32.xlu1 %v2509_v11 }
 0x48f   :  { %v2515_v13 = vpop.xlane.xlu1 %2514 }
 0x490   :  { %v2516_v14 = vsub.f32 %v2509_v11, %v2515_v13 }
 0x492   :  { %v2517_v9 = vmul.f32 1.442695, %v2516_v14 }
 0x494   :  { %3298 = vpow2.f32 %v2517_v9 }
 0x4a1   :  { %v3299_v38 = vpop.eup %3298 }
 0x4a2   :  { %2519 = vadd.xlane.f32.xlu0 %v3299_v38 }
 0x52b   :  { %v2520_v16 = vpop.xlane.xlu0 %2519 }
 0x52c   :  { %3300 = vrcp.f32 %v2520_v16 }
 0x539   :  { %v3301_v17 = vpop.eup %3300 }
 0x53a   :  { %v2522_v18 = vmul.f32 %v3301_v17, %v3299_v38 }
 0x53c   :  { %v2525_v19 = vrot.slane %v2522_v18, 1  ;;  %v2529_v21 = vrot.slane %v2522_v18, 2  ;;  %v2523_v22 = vmul.f32 %v2522_v18, %v1522_v31  ;;  %v2533_v24 = vrot.slane %v2522_v18, 3 }
 0x53e   :  { %v2527_v23 = vmul.f32 %v2525_v19, %v1844_v32  ;;  %v2531_v26 = vmul.f32 %v2529_v21, %v2166_v52  ;;  %v2535_v28 = vmul.f32 %v2533_v24, %v3666_v56 }
 0x540   :  { %v2528_v25 = vadd.f32 %v2527_v23, %v2523_v22 }
 0x542   :  { %v2532_v27 = vadd.f32 %v2531_v26, %v2528_v25 }
 0x544   :  { %v2536_v29 = vadd.f32 %v2535_v28, %v2532_v27 }
 0x546   :  { %v2538_v30 = vrot.slane %v2536_v29, 3 }
 0x548   :  { %v2541_v33 = vsel %vm2540_vm1, %v2536_v29, %v2538_v30 }
 0x549   :  { %2542 = vst [vmem:[#allocation14] sm:$0x3] %v2541_v33 }
 0x54a   :  { %3456 = shalt.err (!%p3453_p11)
}
 0x54b   :  { %2552 = dma.vmem_to_hbm [thread:$0]  %s2550_s3, 32, %s3716_s11, [#allocation4]  }
 0x54c   :  { %3473 = dma.done.wait [#allocation4], 32  }
 0x54d   :  { %3474 = vsyncadd [#allocation4], 4294967264 }
 0x54e   :  { %2556 = vsyncpa [#allocation3], 1 }
 0x54f   :  { %2557 = vsyncpa [#allocation6], 1 }
 0x550   :  { %2558 = vsyncpa [#allocation9], 1 }
 0x551   :  { %2559 = vsyncpa [#allocation12], 1 }
 0x552   :  { %2560 = vsyncpa [#allocation4], 1 }

</bundles_post_ra>
